<compile_context>
chip_gen: v6e
topology: v6e:2x2x1
jax: 0.10.0
libtpu: 0.0.40
codegen_flags: <defaults>
</compile_context>

<pallas_src>
import jax
import jax.numpy as jnp
from jax.experimental import pallas as pl
from jax.experimental.pallas import tpu as pltpu


def _round_up(x, m):
    return ((x + m - 1) // m) * m


def _pad2(a, rows, cols):
    return jnp.pad(a, ((0, rows - a.shape[0]), (0, cols - a.shape[1])))


# --------------------------------------------------------------------------- #
# Fast path: everything resident in VMEM, one grid step, static layer loop.   #
# --------------------------------------------------------------------------- #
def _stacked_lstm_fused_kernel(x_ref, h0_ref, c0_ref, w_ref, b_ref,
                               h1_ref, c1_ref, xh_ref):
    """All layers in a single grid step; the layer loop is a static Python
    loop (this path is only selected when the weight stack is small, so the
    unroll stays cheap to trace/compile)."""
    L, B, Hp = h0_ref.shape          # Hp: padded hidden width (multiple of 128)
    Dp = x_ref.shape[-1]             # Dp: padded input width  (multiple of 128)

    xh_ref[...] = jnp.zeros_like(xh_ref)
    xh_ref[:, :Dp] = x_ref[...].astype(jnp.float32)

    for l in range(L):
        # Fused feature vector [x_or_h_prev ; h_0[l]].
        xh_ref[:, Dp:] = h0_ref[l].astype(jnp.float32)

        # One MXU dot per layer: bf16 x bf16 inputs, f32 accumulation.
        gates = jnp.dot(xh_ref[...].astype(jnp.bfloat16), w_ref[l],
                        preferred_element_type=jnp.float32) + b_ref[l]

        # Lane-aligned gate blocks, PyTorch order [i, f, g, o].
        i_g = jax.nn.sigmoid(gates[:, 0 * Hp:1 * Hp])
        f_g = jax.nn.sigmoid(gates[:, 1 * Hp:2 * Hp])
        g_g = jnp.tanh(gates[:, 2 * Hp:3 * Hp])
        o_g = jax.nn.sigmoid(gates[:, 3 * Hp:4 * Hp])

        c_new = f_g * c0_ref[l].astype(jnp.float32) + i_g * g_g
        h_new = o_g * jnp.tanh(c_new)

        c1_ref[l] = c_new.astype(c1_ref.dtype)
        h1_ref[l] = h_new.astype(h1_ref.dtype)

        # Hand the activation to the next layer entirely in VMEM.
        # (Dropout between layers: identity, eval mode.)
        xh_ref[:, :Hp] = h_new
        if Dp > Hp:  # keep the stale-x columns exactly zero for layers >= 1
            xh_ref[:, Hp:Dp] = jnp.zeros((B, Dp - Hp), jnp.float32)


def _stacked_lstm_fused_call(x_pad, h0_pad, c0_pad, w, b, *, vmem_limit):
    L, B, Hp = h0_pad.shape
    Dp = x_pad.shape[-1]
    _, K, G = w.shape
    return pl.pallas_call(
        _stacked_lstm_fused_kernel,
        out_shape=(
            jax.ShapeDtypeStruct((L, B, Hp), jnp.float32),
            jax.ShapeDtypeStruct((L, B, Hp), jnp.float32),
        ),
        grid_spec=pltpu.PrefetchScalarGridSpec(
            num_scalar_prefetch=0,
            grid=(1,),
            in_specs=[
                pl.BlockSpec((B, Dp), lambda i: (0, 0)),           # x
                pl.BlockSpec((L, B, Hp), lambda i: (0, 0, 0)),     # h_0
                pl.BlockSpec((L, B, Hp), lambda i: (0, 0, 0)),     # c_0
                pl.BlockSpec((L, K, G), lambda i: (0, 0, 0)),      # fused W (bf16)
                pl.BlockSpec((L, 1, G), lambda i: (0, 0, 0)),      # fused bias (f32)
            ],
            out_specs=(
                pl.BlockSpec((L, B, Hp), lambda i: (0, 0, 0)),     # h_1
                pl.BlockSpec((L, B, Hp), lambda i: (0, 0, 0)),     # c_1
            ),
            scratch_shapes=[pltpu.VMEM((B, K), jnp.float32)],      # [x ; h] carry
        ),
        compiler_params=pltpu.CompilerParams(
            dimension_semantics=("arbitrary",),
            vmem_limit_bytes=vmem_limit),
    )(x_pad, h0_pad, c0_pad, w, b)


_fused_call_jit = jax.jit(_stacked_lstm_fused_call, static_argnames=("vmem_limit",))


# --------------------------------------------------------------------------- #
# Large-model path: grid = (layer, gate-block); one (K, Hp) weight tile/step.  #
# --------------------------------------------------------------------------- #
def _stacked_lstm_tiled_kernel(x_ref, h0_ref, c0_ref, w_ref, b_ref,
                               h1_ref, c1_ref, xh_ref, pre_ref):
    l = pl.program_id(0)
    g = pl.program_id(1)
    n_g = pl.num_programs(1)
    B, Hp = h0_ref.shape
    Dp = x_ref.shape[-1]

    # First gate block of layer 0: load the external input into the scratch.
    @pl.when(jnp.logical_and(l == 0, g == 0))
    def _():
        xh_ref[...] = jnp.zeros_like(xh_ref)
        xh_ref[:, :Dp] = x_ref[...].astype(jnp.float32)

    # First gate block of every layer: load this layer's recurrent state.
    @pl.when(g == 0)
    def _():
        xh_ref[:, Dp:] = h0_ref[...].astype(jnp.float32)

    # Pre-activation of this gate block (PyTorch gate order [i, f, g, o]).
    pre = (jnp.dot(xh_ref[...].astype(jnp.bfloat16), w_ref[...],
                   preferred_element_type=jnp.float32) + b_ref[...])
    for gg in range(4):                     # static store index; one branch runs
        @pl.when(g == gg)
        def _(gg=gg):
            pre_ref[gg] = pre

    # Last gate block: apply activations, update state, carry the activation.
    @pl.when(g == n_g - 1)
    def _():
        i_g = jax.nn.sigmoid(pre_ref[0])
        f_g = jax.nn.sigmoid(pre_ref[1])
        g_g = jnp.tanh(pre_ref[2])
        o_g = jax.nn.sigmoid(pre_ref[3])
        c_new = f_g * c0_ref[...].astype(jnp.float32) + i_g * g_g
        h_new = o_g * jnp.tanh(c_new)
        c1_ref[...] = c_new.astype(c1_ref.dtype)
        h1_ref[...] = h_new.astype(h1_ref.dtype)
        # Hand the activation to the next layer (harmless on the last layer).
        xh_ref[:, :Hp] = h_new
        if Dp > Hp:  # keep the stale-x columns exactly zero for layers >= 1
            xh_ref[:, Hp:Dp] = jnp.zeros((B, Dp - Hp), jnp.float32)


def _stacked_lstm_tiled_call(x_pad, h0_pad, c0_pad, w, b, *, vmem_limit):
    L, B, Hp = h0_pad.shape
    Dp = x_pad.shape[-1]
    _, K, G = w.shape
    n_g = G // Hp
    assert n_g == 4 and n_g * Hp == G
    return pl.pallas_call(
        _stacked_lstm_tiled_kernel,
        out_shape=(
            jax.ShapeDtypeStruct((L, B, Hp), jnp.float32),
            jax.ShapeDtypeStruct((L, B, Hp), jnp.float32),
        ),
        grid_spec=pltpu.PrefetchScalarGridSpec(
            num_scalar_prefetch=0,
            grid=(L, n_g),
            in_specs=[
                pl.BlockSpec((B, Dp), lambda l, g: (0, 0)),            # x (resident)
                pl.BlockSpec((None, B, Hp), lambda l, g: (l, 0, 0)),   # h_0[l]
                pl.BlockSpec((None, B, Hp), lambda l, g: (l, 0, 0)),   # c_0[l]
                pl.BlockSpec((None, K, Hp), lambda l, g: (l, 0, g)),   # W gate tile (bf16)
                pl.BlockSpec((None, 1, Hp), lambda l, g: (l, 0, g)),   # bias gate tile
            ],
            out_specs=(
                pl.BlockSpec((None, B, Hp), lambda l, g: (l, 0, 0)),   # h_1[l]
                pl.BlockSpec((None, B, Hp), lambda l, g: (l, 0, 0)),   # c_1[l]
            ),
            scratch_shapes=[
                pltpu.VMEM((B, K), jnp.float32),       # [x ; h] carry
                pltpu.VMEM((4, B, Hp), jnp.float32),   # gate pre-activations
            ],
        ),
        compiler_params=pltpu.CompilerParams(
            dimension_semantics=("arbitrary", "arbitrary"),
            vmem_limit_bytes=vmem_limit),
    )(x_pad, h0_pad, c0_pad, w, b)


_tiled_call_jit = jax.jit(_stacked_lstm_tiled_call, static_argnames=("vmem_limit",))


# --------------------------------------------------------------------------- #
# Module                                                                      #
# --------------------------------------------------------------------------- #
class StackedLSTM:
    """JAX/Pallas port of the PyTorch StackedLSTM module (eval mode)."""

    def __init__(self, num_layers, input_size, hidden_size, dropout, key):
        self.num_layers = num_layers
        self.input_size = input_size
        self.hidden_size = hidden_size
        self.dropout = dropout                      # identity in eval mode
        self.h_pad = _round_up(hidden_size, 128)    # lane-aligned gate blocks
        self.d_pad = max(_round_up(input_size, 128), self.h_pad)

        H, Hp, Dp = hidden_size, self.h_pad, self.d_pad
        k = 1.0 / float(hidden_size) ** 0.5

        self.raw_params = []        # per-layer (w_ih, w_hh, b) f32, for reference
        w_layers, b_layers = [], []
        in_size = input_size
        for _ in range(num_layers):
            key, k1, k2, k3, k4 = jax.random.split(key, 5)
            # PyTorch LSTMCell default init U(-1/sqrt(H), 1/sqrt(H)); transposed layout.
            w_ih = jax.random.uniform(k1, (in_size, 4 * H), jnp.float32, -k, k)
            w_hh = jax.random.uniform(k2, (H, 4 * H), jnp.float32, -k, k)
            b_ih = jax.random.uniform(k3, (1, 4 * H), jnp.float32, -k, k)
            b_hh = jax.random.uniform(k4, (1, 4 * H), jnp.float32, -k, k)
            b = b_ih + b_hh
            self.raw_params.append((w_ih, w_hh, b))

            # Fused, gate-block-padded weight:
            #   rows [0:Dp]      -> input (x / previous-h) features, zero-padded
            #   rows [Dp:Dp+Hp]  -> hidden (h) features, zero-padded
            #   columns          -> 4 gate blocks, each Hp wide (zero-padded)
            gate_cols, bias_cols = [], []
            for g in range(4):
                wx = _pad2(w_ih[:, g * H:(g + 1) * H], Dp, Hp)
                wh = _pad2(w_hh[:, g * H:(g + 1) * H], Hp, Hp)
                gate_cols.append(jnp.concatenate([wx, wh], axis=0))
                bias_cols.append(_pad2(b[:, g * H:(g + 1) * H], 1, Hp))
            w_layers.append(jnp.concatenate(gate_cols, axis=1))
            b_layers.append(jnp.concatenate(bias_cols, axis=1))
            in_size = hidden_size

        # bf16 weights: the kernel is weight-bandwidth bound, so this roughly
        # halves wall time at real sizes (zero padding stays exactly zero in
        # bf16, so the padded rows/columns remain inert).
        self.w = jnp.stack(w_layers).astype(jnp.bfloat16)   # (L, Dp+Hp, 4*Hp)
        self.b = jnp.stack(b_layers)                         # (L, 1, 4*Hp) f32

    # ---- planning -------------------------------------------------------- #
    def _plan(self, batch):
        L, K, G = self.w.shape
        B, Hp, Dp = batch, self.h_pad, self.d_pad
        state = 4 * L * B * Hp * 4                              # h0, c0, h1, c1
        # fast path: everything resident at once (2x = conservative buffering)
        fast_need = 2 * (L * K * G * 2 + L * G * 4 + B * Dp * 4 + state) + B * K * 4
        # tiled path: (K, Hp) weight tile double-buffered + per-layer state blocks
        tiled_need = (2 * (K * Hp * 2 + Hp * 4 + 4 * B * Hp * 4)
                      + 2 * B * Dp * 4 + B * K * 4 + 4 * B * Hp * 4)
        use_fast = fast_need <= 28 * 2 ** 20
        need = fast_need if use_fast else tiled_need
        vmem_limit = int(min(max(need + 8 * 2 ** 20, 16 * 2 ** 20), 64 * 2 ** 20))
        return use_fast, vmem_limit

    def _forward_padded(self, x_pad, h0_pad, c0_pad, force_path=None):
        use_fast, vmem_limit = self._plan(x_pad.shape[0])
        if force_path is not None:
            use_fast = (force_path == "fused")
        call = _fused_call_jit if use_fast else _tiled_call_jit
        return call(x_pad, h0_pad, c0_pad, self.w, self.b, vmem_limit=vmem_limit)

    def _pad_inputs(self, inp, h_0, c_0):
        H, Hp, Dp = self.hidden_size, self.h_pad, self.d_pad
        x_pad = jnp.pad(inp.astype(jnp.float32),
                        ((0, 0), (0, Dp - inp.shape[-1])))
        h0_pad = jnp.pad(h_0.astype(jnp.float32), ((0, 0), (0, 0), (0, Hp - H)))
        c0_pad = jnp.pad(c_0.astype(jnp.float32), ((0, 0), (0, 0), (0, Hp - H)))
        return x_pad, h0_pad, c0_pad

    # ---- PyTorch-shaped interface ----------------------------------------- #
    def __call__(self, inp, hidden):
        h_0, c_0 = hidden
        H = self.hidden_size
        x_pad, h0_pad, c0_pad = self._pad_inputs(inp, h_0, c_0)
        h1_pad, c1_pad = self._forward_padded(x_pad, h0_pad, c0_pad)
        h_1 = h1_pad[:, :, :H]
        c_1 = c1_pad[:, :, :H]
        # dropout between layers: identity (eval mode)
        return h_1[-1], (h_1, c_1)

    # ---- scan-friendly padded-state interface ------------------------------ #
    def call_padded(self, x_pad, hidden_pad):
        """State stays in the lane-padded (L, B, Hp) layout end-to-end, so a
        per-timestep scan never round-trips pad/slice of h/c through HBM.
        Contract: the pad columns [hidden_size:Hp] of h/c must be zero on the
        first step (the recurrence then keeps them exactly zero)."""
        h0_pad, c0_pad = hidden_pad
        h1_pad, c1_pad = self._forward_padded(x_pad, h0_pad, c0_pad)
        return h1_pad[-1], (h1_pad, c1_pad)


# --------------------------------------------------------------------------- #
# Self-test                                                                   #
# --------------------------------------------------------------------------- #
if __name__ == "__main__":
    num_layers = 3
    batch = 8            # fills all 8 f32 sublanes per vreg
    input_size = 16
    hidden_size = 32
    dropout = 0.0

    root = jax.random.PRNGKey(0)
    k_params, k_x, k_h, k_c = jax.random.split(root, 4)

    model = StackedLSTM(num_layers, input_size, hidden_size, dropout, k_params)

    x = jax.random.normal(k_x, (batch, input_size), jnp.float32)
    h_0 = jax.random.normal(k_h, (num_layers, batch, hidden_size), jnp.float32)
    c_0 = jax.random.normal(k_c, (num_layers, batch, hidden_size), jnp.float32)

    out, (h_1, c_1) = model(x, (h_0, c_0))
    out = jax.block_until_ready(out)
    h_1 = jax.block_until_ready(h_1)
    c_1 = jax.block_until_ready(c_1)

    # --- cross-check the two kernel paths against each other ----------------
    x_pad, h0_pad, c0_pad = model._pad_inputs(x, h_0, c_0)
    h1_f, c1_f = model._forward_padded(x_pad, h0_pad, c0_pad, force_path="fused")
    h1_t, c1_t = model._forward_padded(x_pad, h0_pad, c0_pad, force_path="tiled")
    jax.block_until_ready((h1_f, c1_f, h1_t, c1_t))
    assert jnp.allclose(h1_f, h1_t, atol=1e-4)
    assert jnp.allclose(c1_f, c1_t, atol=1e-4)

    # --- padded-state entry point matches the PyTorch-shaped one ------------
    out_p, (h1_p, c1_p) = model.call_padded(x_pad, (h0_pad, c0_pad))
    jax.block_until_ready(out_p)
    assert jnp.allclose(h1_p[:, :, :hidden_size], h_1, atol=1e-6)
    assert jnp.allclose(c1_p[:, :, :hidden_size], c_1, atol=1e-6)

    # --- reference checks ----------------------------------------------------
    def ref_cell(xx, hh, cc, w_ih, w_hh, b, emulate_bf16):
        rnd = ((lambda a: a.astype(jnp.bfloat16).astype(jnp.float32))
               if emulate_bf16 else (lambda a: a))
        gates = rnd(xx) @ rnd(w_ih) + rnd(hh) @ rnd(w_hh) + b
        H = hh.shape[-1]
        i_g = jax.nn.sigmoid(gates[:, :H])
        f_g = jax.nn.sigmoid(gates[:, H:2 * H])
        g_g = jnp.tanh(gates[:, 2 * H:3 * H])
        o_g = jax.nn.sigmoid(gates[:, 3 * H:])
        c_new = f_g * cc + i_g * g_g
        h_new = o_g * jnp.tanh(c_new)
        return h_new, c_new

    def run_ref(emulate_bf16):
        inp = x
        hs, cs = [], []
        for i in range(num_layers):
            w_ih, w_hh, b = model.raw_params[i]
            h_i, c_i = ref_cell(inp, h_0[i], c_0[i], w_ih, w_hh, b, emulate_bf16)
            inp = h_i
            hs.append(h_i)
            cs.append(c_i)
        return inp, jnp.stack(hs), jnp.stack(cs)

    out_bf, h_ref_bf, c_ref_bf = run_ref(True)       # same numerics as the kernel
    out_f32, h_ref_f32, c_ref_f32 = run_ref(False)   # exact f32 PyTorch semantics

    assert out.shape == (batch, hidden_size)
    assert h_1.shape == (num_layers, batch, hidden_size)
    assert c_1.shape == (num_layers, batch, hidden_size)
    # tight check vs. a reference that emulates the kernel's bf16 inputs
    assert jnp.allclose(out, out_bf, atol=2e-3)
    assert jnp.allclose(h_1, h_ref_bf, atol=2e-3)
    assert jnp.allclose(c_1, c_ref_bf, atol=2e-3)
    # loose check vs. the original f32 semantics (only bf16 weight rounding)
    assert jnp.allclose(h_1, h_ref_f32, atol=5e-2)
    assert jnp.allclose(c_1, c_ref_f32, atol=5e-2)

    print("KERNEL_OK")
</pallas_src>

<mosaic_0001>
module attributes {stable_mosaic.version = 11 : i64} {
  func.func @_stacked_lstm_fused_kernel(%arg0: i32, %arg1: memref<8x128xf32, #tpu.memory_space<vmem>>, %arg2: memref<3x8x128xf32, #tpu.memory_space<vmem>>, %arg3: memref<3x8x128xf32, #tpu.memory_space<vmem>>, %arg4: memref<3x256x512xbf16, #tpu.memory_space<vmem>>, %arg5: memref<3x1x512xf32, #tpu.memory_space<vmem>>, %arg6: memref<3x8x128xf32, #tpu.memory_space<vmem>>, %arg7: memref<3x8x128xf32, #tpu.memory_space<vmem>>, %arg8: memref<8x256xf32, #tpu.memory_space<vmem>>) attributes {dimension_semantics = [#tpu.dimension_semantics<arbitrary>], iteration_bounds = array<i64: 1>, scalar_prefetch = 0 : i64, scratch_operands = 1 : i64, tpu.core_type = #tpu.core_type<tc>, window_params = [{pipeline_mode = #tpu.pipeline_mode<synchronous>, transform_indices = @transform_0, window_bounds = array<i64: 8, 128>}, {pipeline_mode = #tpu.pipeline_mode<synchronous>, transform_indices = @transform_1, window_bounds = array<i64: 3, 8, 128>}, {pipeline_mode = #tpu.pipeline_mode<synchronous>, transform_indices = @transform_2, window_bounds = array<i64: 3, 8, 128>}, {pipeline_mode = #tpu.pipeline_mode<synchronous>, transform_indices = @transform_3, window_bounds = array<i64: 3, 256, 512>}, {pipeline_mode = #tpu.pipeline_mode<synchronous>, transform_indices = @transform_4, window_bounds = array<i64: 3, 1, 512>}, {pipeline_mode = #tpu.pipeline_mode<synchronous>, transform_indices = @transform_5, window_bounds = array<i64: 3, 8, 128>}, {pipeline_mode = #tpu.pipeline_mode<synchronous>, transform_indices = @transform_6, window_bounds = array<i64: 3, 8, 128>}]} {
    %cst = arith.constant 0.000000e+00 : f32
    %0 = vector.broadcast %cst : f32 to vector<8x256xf32>
    %c0 = arith.constant 0 : index
    %c0_0 = arith.constant 0 : index
    %1 = vector.load %arg8[%c0, %c0_0] : memref<8x256xf32, #tpu.memory_space<vmem>>, vector<8x256xf32>
    tpu.vector_store %arg8[%c0, %c0_0], %0 {strides = array<i32>} : memref<8x256xf32, #tpu.memory_space<vmem>>, vector<8x256xf32>,
    %c0_1 = arith.constant 0 : index
    %c0_2 = arith.constant 0 : index
    %2 = vector.load %arg1[%c0_1, %c0_2] : memref<8x128xf32, #tpu.memory_space<vmem>>, vector<8x128xf32>
    %c0_3 = arith.constant 0 : index
    %c0_4 = arith.constant 0 : index
    %3 = vector.load %arg8[%c0_3, %c0_4] : memref<8x256xf32, #tpu.memory_space<vmem>>, vector<8x128xf32>
    tpu.vector_store %arg8[%c0_3, %c0_4], %2 {strides = array<i32>} : memref<8x256xf32, #tpu.memory_space<vmem>>, vector<8x128xf32>,
    %c0_5 = arith.constant 0 : index
    %c0_6 = arith.constant 0 : index
    %c0_7 = arith.constant 0 : index
    %4 = vector.load %arg2[%c0_5, %c0_6, %c0_7] : memref<3x8x128xf32, #tpu.memory_space<vmem>>, vector<1x8x128xf32>
    %5 = vector.shape_cast %4 : vector<1x8x128xf32> to vector<8x128xf32>
    %c0_8 = arith.constant 0 : index
    %c128 = arith.constant 128 : index
    %6 = vector.load %arg8[%c0_8, %c128] : memref<8x256xf32, #tpu.memory_space<vmem>>, vector<8x128xf32>
    tpu.vector_store %arg8[%c0_8, %c128], %5 {strides = array<i32>} : memref<8x256xf32, #tpu.memory_space<vmem>>, vector<8x128xf32>,
    %c0_9 = arith.constant 0 : index
    %c0_10 = arith.constant 0 : index
    %7 = vector.load %arg8[%c0_9, %c0_10] : memref<8x256xf32, #tpu.memory_space<vmem>>, vector<8x256xf32>
    %8 = arith.truncf %7 : vector<8x256xf32> to vector<8x256xbf16>
    %c0_11 = arith.constant 0 : index
    %c0_12 = arith.constant 0 : index
    %c0_13 = arith.constant 0 : index
    %9 = vector.load %arg4[%c0_11, %c0_12, %c0_13] : memref<3x256x512xbf16, #tpu.memory_space<vmem>>, vector<1x256x512xbf16>
    %10 = vector.shape_cast %9 : vector<1x256x512xbf16> to vector<256x512xbf16>
    %cst_14 = arith.constant dense<0.000000e+00> : vector<8x512xf32>
    %11 = tpu.matmul %8, %10, %cst_14 {dimension_numbers = #tpu.dot_dimension_numbers<[1], [0], [0], [1], [0, 0, 1, 1], [], []>} : vector<8x256xbf16>, vector<256x512xbf16>, vector<8x512xf32> -> vector<8x512xf32>
    %c0_15 = arith.constant 0 : index
    %c0_16 = arith.constant 0 : index
    %c0_17 = arith.constant 0 : index
    %12 = vector.load %arg5[%c0_15, %c0_16, %c0_17] : memref<3x1x512xf32, #tpu.memory_space<vmem>>, vector<1x1x512xf32>
    %13 = vector.shape_cast %12 : vector<1x1x512xf32> to vector<1x512xf32>
    %14 = vector.broadcast %13 : vector<1x512xf32> to vector<8x512xf32>
    %15 = arith.addf %11, %14 : vector<8x512xf32>
    %16 = vector.extract_strided_slice %15 {offsets = [0, 0], sizes = [8, 128], strides = [1, 1]} : vector<8x512xf32> to vector<8x128xf32>
    %17 = arith.negf %16 : vector<8x128xf32>
    %18 = math.exp %17 : vector<8x128xf32>
    %cst_18 = arith.constant 1.000000e+00 : f32
    %19 = vector.broadcast %cst_18 : f32 to vector<8x128xf32>
    %20 = arith.addf %19, %18 : vector<8x128xf32>
    %21 = arith.divf %19, %20 : vector<8x128xf32>
    %22 = vector.extract_strided_slice %15 {offsets = [0, 128], sizes = [8, 128], strides = [1, 1]} : vector<8x512xf32> to vector<8x128xf32>
    %23 = arith.negf %22 : vector<8x128xf32>
    %24 = math.exp %23 : vector<8x128xf32>
    %cst_19 = arith.constant 1.000000e+00 : f32
    %25 = vector.broadcast %cst_19 : f32 to vector<8x128xf32>
    %26 = arith.addf %25, %24 : vector<8x128xf32>
    %27 = arith.divf %25, %26 : vector<8x128xf32>
    %28 = vector.extract_strided_slice %15 {offsets = [0, 256], sizes = [8, 128], strides = [1, 1]} : vector<8x512xf32> to vector<8x128xf32>
    %29 = math.tanh %28 : vector<8x128xf32>
    %30 = vector.extract_strided_slice %15 {offsets = [0, 384], sizes = [8, 128], strides = [1, 1]} : vector<8x512xf32> to vector<8x128xf32>
    %31 = arith.negf %30 : vector<8x128xf32>
    %32 = math.exp %31 : vector<8x128xf32>
    %cst_20 = arith.constant 1.000000e+00 : f32
    %33 = vector.broadcast %cst_20 : f32 to vector<8x128xf32>
    %34 = arith.addf %33, %32 : vector<8x128xf32>
    %35 = arith.divf %33, %34 : vector<8x128xf32>
    %c0_21 = arith.constant 0 : index
    %c0_22 = arith.constant 0 : index
    %c0_23 = arith.constant 0 : index
    %36 = vector.load %arg3[%c0_21, %c0_22, %c0_23] : memref<3x8x128xf32, #tpu.memory_space<vmem>>, vector<1x8x128xf32>
    %37 = vector.shape_cast %36 : vector<1x8x128xf32> to vector<8x128xf32>
    %38 = arith.mulf %27, %37 : vector<8x128xf32>
    %39 = arith.mulf %21, %29 : vector<8x128xf32>
    %40 = arith.addf %38, %39 : vector<8x128xf32>
    %41 = math.tanh %40 : vector<8x128xf32>
    %42 = arith.mulf %35, %41 : vector<8x128xf32>
    %c0_24 = arith.constant 0 : index
    %c0_25 = arith.constant 0 : index
    %c0_26 = arith.constant 0 : index
    %43 = vector.load %arg7[%c0_24, %c0_25, %c0_26] : memref<3x8x128xf32, #tpu.memory_space<vmem>>, vector<1x8x128xf32>
    %44 = vector.shape_cast %43 : vector<1x8x128xf32> to vector<8x128xf32>
    %45 = vector.shape_cast %40 : vector<8x128xf32> to vector<1x8x128xf32>
    tpu.vector_store %arg7[%c0_24, %c0_25, %c0_26], %45 {strides = array<i32>} : memref<3x8x128xf32, #tpu.memory_space<vmem>>, vector<1x8x128xf32>,
    %c0_27 = arith.constant 0 : index
    %c0_28 = arith.constant 0 : index
    %c0_29 = arith.constant 0 : index
    %46 = vector.load %arg6[%c0_27, %c0_28, %c0_29] : memref<3x8x128xf32, #tpu.memory_space<vmem>>, vector<1x8x128xf32>
    %47 = vector.shape_cast %46 : vector<1x8x128xf32> to vector<8x128xf32>
    %48 = vector.shape_cast %42 : vector<8x128xf32> to vector<1x8x128xf32>
    tpu.vector_store %arg6[%c0_27, %c0_28, %c0_29], %48 {strides = array<i32>} : memref<3x8x128xf32, #tpu.memory_space<vmem>>, vector<1x8x128xf32>,
    %c0_30 = arith.constant 0 : index
    %c0_31 = arith.constant 0 : index
    %49 = vector.load %arg8[%c0_30, %c0_31] : memref<8x256xf32, #tpu.memory_space<vmem>>, vector<8x128xf32>
    tpu.vector_store %arg8[%c0_30, %c0_31], %42 {strides = array<i32>} : memref<8x256xf32, #tpu.memory_space<vmem>>, vector<8x128xf32>,
    %c1 = arith.constant 1 : index
    %c0_32 = arith.constant 0 : index
    %c0_33 = arith.constant 0 : index
    %50 = vector.load %arg2[%c1, %c0_32, %c0_33] : memref<3x8x128xf32, #tpu.memory_space<vmem>>, vector<1x8x128xf32>
    %51 = vector.shape_cast %50 : vector<1x8x128xf32> to vector<8x128xf32>
    %c0_34 = arith.constant 0 : index
    %c128_35 = arith.constant 128 : index
    %52 = vector.load %arg8[%c0_34, %c128_35] : memref<8x256xf32, #tpu.memory_space<vmem>>, vector<8x128xf32>
    tpu.vector_store %arg8[%c0_34, %c128_35], %51 {strides = array<i32>} : memref<8x256xf32, #tpu.memory_space<vmem>>, vector<8x128xf32>,
    %c0_36 = arith.constant 0 : index
    %c0_37 = arith.constant 0 : index
    %53 = vector.load %arg8[%c0_36, %c0_37] : memref<8x256xf32, #tpu.memory_space<vmem>>, vector<8x256xf32>
    %54 = arith.truncf %53 : vector<8x256xf32> to vector<8x256xbf16>
    %c1_38 = arith.constant 1 : index
    %c0_39 = arith.constant 0 : index
    %c0_40 = arith.constant 0 : index
    %55 = vector.load %arg4[%c1_38, %c0_39, %c0_40] : memref<3x256x512xbf16, #tpu.memory_space<vmem>>, vector<1x256x512xbf16>
    %56 = vector.shape_cast %55 : vector<1x256x512xbf16> to vector<256x512xbf16>
    %cst_41 = arith.constant dense<0.000000e+00> : vector<8x512xf32>
    %57 = tpu.matmul %54, %56, %cst_41 {dimension_numbers = #tpu.dot_dimension_numbers<[1], [0], [0], [1], [0, 0, 1, 1], [], []>} : vector<8x256xbf16>, vector<256x512xbf16>, vector<8x512xf32> -> vector<8x512xf32>
    %c1_42 = arith.constant 1 : index
    %c0_43 = arith.constant 0 : index
    %c0_44 = arith.constant 0 : index
    %58 = vector.load %arg5[%c1_42, %c0_43, %c0_44] : memref<3x1x512xf32, #tpu.memory_space<vmem>>, vector<1x1x512xf32>
    %59 = vector.shape_cast %58 : vector<1x1x512xf32> to vector<1x512xf32>
    %60 = vector.broadcast %59 : vector<1x512xf32> to vector<8x512xf32>
    %61 = arith.addf %57, %60 : vector<8x512xf32>
    %62 = vector.extract_strided_slice %61 {offsets = [0, 0], sizes = [8, 128], strides = [1, 1]} : vector<8x512xf32> to vector<8x128xf32>
    %63 = arith.negf %62 : vector<8x128xf32>
    %64 = math.exp %63 : vector<8x128xf32>
    %cst_45 = arith.constant 1.000000e+00 : f32
    %65 = vector.broadcast %cst_45 : f32 to vector<8x128xf32>
    %66 = arith.addf %65, %64 : vector<8x128xf32>
    %67 = arith.divf %65, %66 : vector<8x128xf32>
    %68 = vector.extract_strided_slice %61 {offsets = [0, 128], sizes = [8, 128], strides = [1, 1]} : vector<8x512xf32> to vector<8x128xf32>
    %69 = arith.negf %68 : vector<8x128xf32>
    %70 = math.exp %69 : vector<8x128xf32>
    %cst_46 = arith.constant 1.000000e+00 : f32
    %71 = vector.broadcast %cst_46 : f32 to vector<8x128xf32>
    %72 = arith.addf %71, %70 : vector<8x128xf32>
    %73 = arith.divf %71, %72 : vector<8x128xf32>
    %74 = vector.extract_strided_slice %61 {offsets = [0, 256], sizes = [8, 128], strides = [1, 1]} : vector<8x512xf32> to vector<8x128xf32>
    %75 = math.tanh %74 : vector<8x128xf32>
    %76 = vector.extract_strided_slice %61 {offsets = [0, 384], sizes = [8, 128], strides = [1, 1]} : vector<8x512xf32> to vector<8x128xf32>
    %77 = arith.negf %76 : vector<8x128xf32>
    %78 = math.exp %77 : vector<8x128xf32>
    %cst_47 = arith.constant 1.000000e+00 : f32
    %79 = vector.broadcast %cst_47 : f32 to vector<8x128xf32>
    %80 = arith.addf %79, %78 : vector<8x128xf32>
    %81 = arith.divf %79, %80 : vector<8x128xf32>
    %c1_48 = arith.constant 1 : index
    %c0_49 = arith.constant 0 : index
    %c0_50 = arith.constant 0 : index
    %82 = vector.load %arg3[%c1_48, %c0_49, %c0_50] : memref<3x8x128xf32, #tpu.memory_space<vmem>>, vector<1x8x128xf32>
    %83 = vector.shape_cast %82 : vector<1x8x128xf32> to vector<8x128xf32>
    %84 = arith.mulf %73, %83 : vector<8x128xf32>
    %85 = arith.mulf %67, %75 : vector<8x128xf32>
    %86 = arith.addf %84, %85 : vector<8x128xf32>
    %87 = math.tanh %86 : vector<8x128xf32>
    %88 = arith.mulf %81, %87 : vector<8x128xf32>
    %c1_51 = arith.constant 1 : index
    %c0_52 = arith.constant 0 : index
    %c0_53 = arith.constant 0 : index
    %89 = vector.load %arg7[%c1_51, %c0_52, %c0_53] : memref<3x8x128xf32, #tpu.memory_space<vmem>>, vector<1x8x128xf32>
    %90 = vector.shape_cast %89 : vector<1x8x128xf32> to vector<8x128xf32>
    %91 = vector.shape_cast %86 : vector<8x128xf32> to vector<1x8x128xf32>
    tpu.vector_store %arg7[%c1_51, %c0_52, %c0_53], %91 {strides = array<i32>} : memref<3x8x128xf32, #tpu.memory_space<vmem>>, vector<1x8x128xf32>,
    %c1_54 = arith.constant 1 : index
    %c0_55 = arith.constant 0 : index
    %c0_56 = arith.constant 0 : index
    %92 = vector.load %arg6[%c1_54, %c0_55, %c0_56] : memref<3x8x128xf32, #tpu.memory_space<vmem>>, vector<1x8x128xf32>
    %93 = vector.shape_cast %92 : vector<1x8x128xf32> to vector<8x128xf32>
    %94 = vector.shape_cast %88 : vector<8x128xf32> to vector<1x8x128xf32>
    tpu.vector_store %arg6[%c1_54, %c0_55, %c0_56], %94 {strides = array<i32>} : memref<3x8x128xf32, #tpu.memory_space<vmem>>, vector<1x8x128xf32>,
    %c0_57 = arith.constant 0 : index
    %c0_58 = arith.constant 0 : index
    %95 = vector.load %arg8[%c0_57, %c0_58] : memref<8x256xf32, #tpu.memory_space<vmem>>, vector<8x128xf32>
    tpu.vector_store %arg8[%c0_57, %c0_58], %88 {strides = array<i32>} : memref<8x256xf32, #tpu.memory_space<vmem>>, vector<8x128xf32>,
    %c2 = arith.constant 2 : index
    %c0_59 = arith.constant 0 : index
    %c0_60 = arith.constant 0 : index
    %96 = vector.load %arg2[%c2, %c0_59, %c0_60] : memref<3x8x128xf32, #tpu.memory_space<vmem>>, vector<1x8x128xf32>
    %97 = vector.shape_cast %96 : vector<1x8x128xf32> to vector<8x128xf32>
    %c0_61 = arith.constant 0 : index
    %c128_62 = arith.constant 128 : index
    %98 = vector.load %arg8[%c0_61, %c128_62] : memref<8x256xf32, #tpu.memory_space<vmem>>, vector<8x128xf32>
    tpu.vector_store %arg8[%c0_61, %c128_62], %97 {strides = array<i32>} : memref<8x256xf32, #tpu.memory_space<vmem>>, vector<8x128xf32>,
    %c0_63 = arith.constant 0 : index
    %c0_64 = arith.constant 0 : index
    %99 = vector.load %arg8[%c0_63, %c0_64] : memref<8x256xf32, #tpu.memory_space<vmem>>, vector<8x256xf32>
    %100 = arith.truncf %99 : vector<8x256xf32> to vector<8x256xbf16>
    %c2_65 = arith.constant 2 : index
    %c0_66 = arith.constant 0 : index
    %c0_67 = arith.constant 0 : index
    %101 = vector.load %arg4[%c2_65, %c0_66, %c0_67] : memref<3x256x512xbf16, #tpu.memory_space<vmem>>, vector<1x256x512xbf16>
    %102 = vector.shape_cast %101 : vector<1x256x512xbf16> to vector<256x512xbf16>
    %cst_68 = arith.constant dense<0.000000e+00> : vector<8x512xf32>
    %103 = tpu.matmul %100, %102, %cst_68 {dimension_numbers = #tpu.dot_dimension_numbers<[1], [0], [0], [1], [0, 0, 1, 1], [], []>} : vector<8x256xbf16>, vector<256x512xbf16>, vector<8x512xf32> -> vector<8x512xf32>
    %c2_69 = arith.constant 2 : index
    %c0_70 = arith.constant 0 : index
    %c0_71 = arith.constant 0 : index
    %104 = vector.load %arg5[%c2_69, %c0_70, %c0_71] : memref<3x1x512xf32, #tpu.memory_space<vmem>>, vector<1x1x512xf32>
    %105 = vector.shape_cast %104 : vector<1x1x512xf32> to vector<1x512xf32>
    %106 = vector.broadcast %105 : vector<1x512xf32> to vector<8x512xf32>
    %107 = arith.addf %103, %106 : vector<8x512xf32>
    %108 = vector.extract_strided_slice %107 {offsets = [0, 0], sizes = [8, 128], strides = [1, 1]} : vector<8x512xf32> to vector<8x128xf32>
    %109 = arith.negf %108 : vector<8x128xf32>
    %110 = math.exp %109 : vector<8x128xf32>
    %cst_72 = arith.constant 1.000000e+00 : f32
    %111 = vector.broadcast %cst_72 : f32 to vector<8x128xf32>
    %112 = arith.addf %111, %110 : vector<8x128xf32>
    %113 = arith.divf %111, %112 : vector<8x128xf32>
    %114 = vector.extract_strided_slice %107 {offsets = [0, 128], sizes = [8, 128], strides = [1, 1]} : vector<8x512xf32> to vector<8x128xf32>
    %115 = arith.negf %114 : vector<8x128xf32>
    %116 = math.exp %115 : vector<8x128xf32>
    %cst_73 = arith.constant 1.000000e+00 : f32
    %117 = vector.broadcast %cst_73 : f32 to vector<8x128xf32>
    %118 = arith.addf %117, %116 : vector<8x128xf32>
    %119 = arith.divf %117, %118 : vector<8x128xf32>
    %120 = vector.extract_strided_slice %107 {offsets = [0, 256], sizes = [8, 128], strides = [1, 1]} : vector<8x512xf32> to vector<8x128xf32>
    %121 = math.tanh %120 : vector<8x128xf32>
    %122 = vector.extract_strided_slice %107 {offsets = [0, 384], sizes = [8, 128], strides = [1, 1]} : vector<8x512xf32> to vector<8x128xf32>
    %123 = arith.negf %122 : vector<8x128xf32>
    %124 = math.exp %123 : vector<8x128xf32>
    %cst_74 = arith.constant 1.000000e+00 : f32
    %125 = vector.broadcast %cst_74 : f32 to vector<8x128xf32>
    %126 = arith.addf %125, %124 : vector<8x128xf32>
    %127 = arith.divf %125, %126 : vector<8x128xf32>
    %c2_75 = arith.constant 2 : index
    %c0_76 = arith.constant 0 : index
    %c0_77 = arith.constant 0 : index
    %128 = vector.load %arg3[%c2_75, %c0_76, %c0_77] : memref<3x8x128xf32, #tpu.memory_space<vmem>>, vector<1x8x128xf32>
    %129 = vector.shape_cast %128 : vector<1x8x128xf32> to vector<8x128xf32>
    %130 = arith.mulf %119, %129 : vector<8x128xf32>
    %131 = arith.mulf %113, %121 : vector<8x128xf32>
    %132 = arith.addf %130, %131 : vector<8x128xf32>
    %133 = math.tanh %132 : vector<8x128xf32>
    %134 = arith.mulf %127, %133 : vector<8x128xf32>
    %c2_78 = arith.constant 2 : index
    %c0_79 = arith.constant 0 : index
    %c0_80 = arith.constant 0 : index
    %135 = vector.load %arg7[%c2_78, %c0_79, %c0_80] : memref<3x8x128xf32, #tpu.memory_space<vmem>>, vector<1x8x128xf32>
    %136 = vector.shape_cast %135 : vector<1x8x128xf32> to vector<8x128xf32>
    %137 = vector.shape_cast %132 : vector<8x128xf32> to vector<1x8x128xf32>
    tpu.vector_store %arg7[%c2_78, %c0_79, %c0_80], %137 {strides = array<i32>} : memref<3x8x128xf32, #tpu.memory_space<vmem>>, vector<1x8x128xf32>,
    %c2_81 = arith.constant 2 : index
    %c0_82 = arith.constant 0 : index
    %c0_83 = arith.constant 0 : index
    %138 = vector.load %arg6[%c2_81, %c0_82, %c0_83] : memref<3x8x128xf32, #tpu.memory_space<vmem>>, vector<1x8x128xf32>
    %139 = vector.shape_cast %138 : vector<1x8x128xf32> to vector<8x128xf32>
    %140 = vector.shape_cast %134 : vector<8x128xf32> to vector<1x8x128xf32>
    tpu.vector_store %arg6[%c2_81, %c0_82, %c0_83], %140 {strides = array<i32>} : memref<3x8x128xf32, #tpu.memory_space<vmem>>, vector<1x8x128xf32>,
    %c0_84 = arith.constant 0 : index
    %c0_85 = arith.constant 0 : index
    %141 = vector.load %arg8[%c0_84, %c0_85] : memref<8x256xf32, #tpu.memory_space<vmem>>, vector<8x128xf32>
    tpu.vector_store %arg8[%c0_84, %c0_85], %134 {strides = array<i32>} : memref<8x256xf32, #tpu.memory_space<vmem>>, vector<8x128xf32>,
    return
  }
  func.func @transform_0(%arg0: i32) -> (i32, i32) {
    %c0_i32 = arith.constant 0 : i32
    %c0_i32_0 = arith.constant 0 : i32
    %c0_i32_1 = arith.constant 0 : i32
    return %c0_i32, %c0_i32_0 : i32, i32
  }
  func.func @transform_1(%arg0: i32) -> (i32, i32, i32) {
    %c0_i32 = arith.constant 0 : i32
    %c0_i32_0 = arith.constant 0 : i32
    %c0_i32_1 = arith.constant 0 : i32
    %c0_i32_2 = arith.constant 0 : i32
    return %c0_i32, %c0_i32_0, %c0_i32_1 : i32, i32, i32
  }
  func.func @transform_2(%arg0: i32) -> (i32, i32, i32) {
    %c0_i32 = arith.constant 0 : i32
    %c0_i32_0 = arith.constant 0 : i32
    %c0_i32_1 = arith.constant 0 : i32
    %c0_i32_2 = arith.constant 0 : i32
    return %c0_i32, %c0_i32_0, %c0_i32_1 : i32, i32, i32
  }
  func.func @transform_3(%arg0: i32) -> (i32, i32, i32) {
    %c0_i32 = arith.constant 0 : i32
    %c0_i32_0 = arith.constant 0 : i32
    %c0_i32_1 = arith.constant 0 : i32
    %c0_i32_2 = arith.constant 0 : i32
    return %c0_i32, %c0_i32_0, %c0_i32_1 : i32, i32, i32
  }
  func.func @transform_4(%arg0: i32) -> (i32, i32, i32) {
    %c0_i32 = arith.constant 0 : i32
    %c0_i32_0 = arith.constant 0 : i32
    %c0_i32_1 = arith.constant 0 : i32
    %c0_i32_2 = arith.constant 0 : i32
    return %c0_i32, %c0_i32_0, %c0_i32_1 : i32, i32, i32
  }
  func.func @transform_5(%arg0: i32) -> (i32, i32, i32) {
    %c0_i32 = arith.constant 0 : i32
    %c0_i32_0 = arith.constant 0 : i32
    %c0_i32_1 = arith.constant 0 : i32
    %c0_i32_2 = arith.constant 0 : i32
    return %c0_i32, %c0_i32_0, %c0_i32_1 : i32, i32, i32
  }
  func.func @transform_6(%arg0: i32) -> (i32, i32, i32) {
    %c0_i32 = arith.constant 0 : i32
    %c0_i32_0 = arith.constant 0 : i32
    %c0_i32_1 = arith.constant 0 : i32
    %c0_i32_2 = arith.constant 0 : i32
    return %c0_i32, %c0_i32_0, %c0_i32_1 : i32, i32, i32
  }
}

</mosaic_0001>

<bundles_post_ra>
// kernel: _stacked_lstm_fused_call.1
= control target key start
LH: loop header
LB: loop body
LE: loop exit
PB: predicated region body
PF: predicated region fallthrough
CT: control target
= control target key end

     0   :  { %12 = vsyncpa [#allocation4], 0  ;;  %s2508_s0 = inlined_call_operand.hbm [shape: f32[8,128], index: 0, kind: input, shape index: {}]   ;;  %s2509_s1 = inlined_call_operand.hbm [shape: f32[3,8,128], index: 1, kind: input, shape index: {}]   ;;  %s2510_s2 = inlined_call_operand.hbm [shape: f32[3,8,128], index: 2, kind: input, shape index: {}]   ;;  %s2511_s3 = inlined_call_operand.hbm [shape: bf16[3,256,512], index: 3, kind: input, shape index: {}]   ;;  %s2512_s4 = inlined_call_operand.hbm [shape: f32[3,1,512], index: 4, kind: input, shape index: {}]   ;;  %s2513_s5 = inlined_call_operand.hbm [shape: f32[3,8,128], index: 5, kind: output, shape index: {0}]   ;;  %s2514_s6 = inlined_call_operand.hbm [shape: f32[3,8,128], index: 6, kind: output, shape index: {1}]  }
   0x1   :  { %13 = vsyncpa [#allocation7], 0 }
   0x2   :  { %14 = vsyncpa [#allocation10], 0 }
   0x3   :  { %15 = vsyncpa [#allocation5], 0 }
   0x4   :  { %16 = vsyncpa [#allocation14], 0  ;;  %s2407_s21 = smov [#allocation6]  }
   0x5   :  { %s32_s22 = sshll.u32 %s2407_s21, 4  ;;  %s33_s22 = int_to_ptr.vmem [resolvable:$true] %s32_s22 }
   0x6   :  { %s2265_s23 = scalar_lea.vmem %s33_s22, 384  ;;  %p2270_p1 = scmp.lt.s32.totalorder %s33_s22, %s33_s22 }
   0x7   :  { %p2266_p0 = scmp.ne.s32.totalorder %s33_s22, %s2265_s23  ;;  %p2271_p2 = scmp.lt.s32.totalorder %s2265_s23, %s2265_s23 }
   0x9   :  { %p2272_p3 = por %p2271_p2, %p2270_p1 }
   0xb   :  { %p2273_p4 = pnand %p2272_p3, %p2266_p0 }
   0xd   :  { %2276 = shalt.err (!%p2273_p4)
}
   0xe   :  { %s2408_s24 = smov 128   ;;  %s2409_s25 = smov 8  }
   0xf   :  { %38 = dma.hbm_to_vmem [thread:$0]  %s2509_s1, 384, %s33_s22, [#allocation7], %s2408_s24, %s2408_s24, %s2409_s25  }
  0x10   :  { %s2410_s28 = smov [#allocation9]  }
  0x11   :  { %s56_s29 = sshll.u32 %s2410_s28, 4  ;;  %s57_s29 = int_to_ptr.vmem [resolvable:$true] %s56_s29 }
  0x12   :  { %s2285_s30 = scalar_lea.vmem %s57_s29, 24576  ;;  %p2290_p6 = scmp.lt.s32.totalorder %s57_s29, %s57_s29 }
  0x13   :  { %p2286_p5 = scmp.ne.s32.totalorder %s57_s29, %s2285_s30  ;;  %p2291_p7 = scmp.lt.s32.totalorder %s2285_s30, %s2285_s30 }
  0x15   :  { %p2292_p8 = por %p2291_p7, %p2290_p6 }
  0x17   :  { %p2293_p9 = pnand %p2292_p8, %p2286_p5 }
  0x19   :  { %2296 = shalt.err (!%p2293_p9)
}
  0x1a   :  { %s2411_s7 = smov 256   ;;  %s2412_s8 = smov 16  }
  0x1b   :  { %62 = dma.hbm_to_vmem [thread:$0]  %s2511_s3, 24576, %s57_s29, [#allocation10], %s2411_s7, %s2411_s7, %s2412_s8  }
  0x1c   :  { %s2413_s11 = smov [#allocation3]   ;;  %s2414_s13 = smov [#allocation8]  }
  0x1d   :  { %s23_s12 = sshll.u32 %s2413_s11, 4  ;;  %s44_s1 = sshll.u32 %s2414_s13, 4  ;;  %s24_s12 = int_to_ptr.vmem [resolvable:$true] %s23_s12  ;;  %s45_s1 = int_to_ptr.vmem [resolvable:$true] %s44_s1 }
  0x1e   :  { %s2305_s14 = scalar_lea.vmem %s24_s12, 128  ;;  %p2310_p11 = scmp.lt.s32.totalorder %s24_s12, %s24_s12 }
  0x1f   :  { %p2306_p10 = scmp.ne.s32.totalorder %s24_s12, %s2305_s14  ;;  %p2311_p12 = scmp.lt.s32.totalorder %s2305_s14, %s2305_s14 }
  0x21   :  { %p2312_p13 = por %p2311_p12, %p2310_p11 }
  0x23   :  { %p2313_p0 = pnand %p2312_p13, %p2306_p10 }
  0x25   :  { %2316 = shalt.err (!%p2313_p0)
}
  0x26   :  { %26 = dma.hbm_to_vmem [thread:$0]  %s2508_s0, 128, %s24_s12, [#allocation4]  }
  0x27   :  { %s2325_s17 = scalar_lea.vmem %s45_s1, 384  ;;  %p2330_p2 = scmp.lt.s32.totalorder %s45_s1, %s45_s1 }
  0x28   :  { %p2326_p1 = scmp.ne.s32.totalorder %s45_s1, %s2325_s17  ;;  %p2331_p3 = scmp.lt.s32.totalorder %s2325_s17, %s2325_s17 }
  0x2a   :  { %p2332_p4 = por %p2331_p3, %p2330_p2 }
  0x2c   :  { %p2333_p5 = pnand %p2332_p4, %p2326_p1 }
  0x2e   :  { %2336 = shalt.err (!%p2333_p5)
}
  0x2f   :  { %50 = dma.hbm_to_vmem [thread:$0]  %s2510_s2, 384, %s45_s1, [#allocation7], %s2408_s24, %s2408_s24, %s2409_s25  }
  0x30   :  { %s2415_s19 = smov [#allocation11]  }
  0x31   :  { %s68_s20 = sshll.u32 %s2415_s19, 4  ;;  %s69_s20 = int_to_ptr.vmem [resolvable:$true] %s68_s20 }
  0x32   :  { %s2345_s21 = scalar_lea.vmem %s69_s20, 192  ;;  %p2350_p7 = scmp.lt.s32.totalorder %s69_s20, %s69_s20 }
  0x33   :  { %p2346_p6 = scmp.ne.s32.totalorder %s69_s20, %s2345_s21  ;;  %p2351_p8 = scmp.lt.s32.totalorder %s2345_s21, %s2345_s21 }
  0x35   :  { %p2352_p9 = por %p2351_p8, %p2350_p7 }
  0x37   :  { %p2353_p10 = pnand %p2352_p9, %p2346_p6 }
  0x39   :  { %2356 = shalt.err (!%p2353_p10)
}
  0x3a   :  { %s2416_s0 = smov 64   ;;  %s2417_s22 = smov 4  }
  0x3b   :  { %74 = dma.hbm_to_vmem [thread:$0]  %s2512_s4, 192, %s69_s20, [#allocation10], %s2416_s0, %s2416_s0, %s2417_s22  }
  0x3c   :  { %2397 = dma.done.wait [#allocation4], 128  }
  0x3d   :  { %2398 = vsyncadd [#allocation4], 4294967168 }
  0x3e   :  { %2399 = dma.done.wait [#allocation7], 768  }
  0x3f   :  { %2400 = vsyncadd [#allocation7], 4294966528 }
  0x40   :  { %2401 = dma.done.wait [#allocation10], 24768  }
  0x41   :  { %2402 = vsyncadd [#allocation10], 4294942528  ;;  %v1921_v0 = vld [vmem:[#allocation9 + $0xe4] ss:$16 sps:$4 sm:$0xff]   ;;  %v1923_v1 = vld [vmem:[#allocation9 + $0xe0] ss:$16 sps:$4 sm:$0xff]  }
  0x42   :  { %506 = vmatprep.subr.bf16.mxu0 %v1921_v0  ;;  %v1924_v2 = vld [vmem:[#allocation9 + $0xc4] ss:$16 sps:$4 sm:$0xff]   ;;  %v1926_v3 = vld [vmem:[#allocation9 + $0xc0] ss:$16 sps:$4 sm:$0xff]   ;;  %v1932_v5 = vld [vmem:[#allocation9 + $0xec] ss:$16 sps:$4 sm:$0xff]  }
  0x43   :  { %507 = vmatpush1.bf16.msra.mxu0 %v1923_v1  ;;  %v1927_v4 = vld [vmem:[#allocation9 + $0xa4] ss:$16 sps:$4 sm:$0xff]   ;;  %v1935_v6 = vld [vmem:[#allocation9 + $0xe8] ss:$16 sps:$4 sm:$0xff]   ;;  %v1929_v7 = vld [vmem:[#allocation9 + $0xa0] ss:$16 sps:$4 sm:$0xff]   ;;  %547 = vmatprep.subr.bf16.mxu1 %v1932_v5 }
  0x44   :  { %508 = vmatprep.subr.bf16.mxu0 %v1924_v2  ;;  %v1930_v8 = vld [vmem:[#allocation9 + $0x84] ss:$16 sps:$4 sm:$0xff]   ;;  %548 = vmatpush1.bf16.msra.mxu1 %v1935_v6  ;;  %v1938_v9 = vld [vmem:[#allocation9 + $0xcc] ss:$16 sps:$4 sm:$0xff]   ;;  %v1941_v10 = vld [vmem:[#allocation9 + $0xc8] ss:$16 sps:$4 sm:$0xff]  }
  0x45   :  { %549 = vmatprep.subr.bf16.mxu1 %v1938_v9  ;;  %v1934_v11 = vld [vmem:[#allocation9 + $0x80] ss:$16 sps:$4 sm:$0xff]   ;;  %v1936_v12 = vld [vmem:[#allocation9 + $0x64] ss:$16 sps:$4 sm:$0xff]   ;;  %v1944_v13 = vld [vmem:[#allocation9 + $0xac] ss:$16 sps:$4 sm:$0xff]  }
  0x46   :  { %v1947_v14 = vld [vmem:[#allocation9 + $0xa8] ss:$16 sps:$4 sm:$0xff]   ;;  %v1950_v15 = vld [vmem:[#allocation9 + $0x8c] ss:$16 sps:$4 sm:$0xff]   ;;  %v1940_v16 = vld [vmem:[#allocation9 + $0x60] ss:$16 sps:$4 sm:$0xff]  }
  0x47   :  { %509 = vmatpush1.bf16.msra.mxu0 %v1926_v3  ;;  %v1942_v17 = vld [vmem:[#allocation9 + $0x44] ss:$16 sps:$4 sm:$0xff]   ;;  %v1953_v18 = vld [vmem:[#allocation9 + $0x88] ss:$16 sps:$4 sm:$0xff]   ;;  %v1956_v19 = vld [vmem:[#allocation9 + $0x6c] ss:$16 sps:$4 sm:$0xff]  }
  0x48   :  { %510 = vmatprep.subr.bf16.mxu0 %v1927_v4  ;;  %550 = vmatpush1.bf16.msra.mxu1 %v1941_v10  ;;  %v1946_v20 = vld [vmem:[#allocation9 + $0x40] ss:$16 sps:$4 sm:$0xff]   ;;  %v1948_v21 = vld [vmem:[#allocation9 + $0x24] ss:$16 sps:$4 sm:$0xff]   ;;  %v1959_v22 = vld [vmem:[#allocation9 + $0x68] ss:$16 sps:$4 sm:$0xff]  }
  0x49   :  { %551 = vmatprep.subr.bf16.mxu1 %v1944_v13  ;;  %v1962_v23 = vld [vmem:[#allocation9 + $0x4c] ss:$16 sps:$4 sm:$0xff]   ;;  %v1952_v24 = vld [vmem:[#allocation9 + $0x20] ss:$16 sps:$4 sm:$0xff]   ;;  %v1954_v25 = vld [vmem:[#allocation9 + $0x4] ss:$16 sps:$4 sm:$0xff]  }
  0x4a   :  { %v1965_v26 = vld [vmem:[#allocation9 + $0x48] ss:$16 sps:$4 sm:$0xff]   ;;  %v1968_v27 = vld [vmem:[#allocation9 + $0x2c] ss:$16 sps:$4 sm:$0xff]   ;;  %v1958_v28 = vld [vmem:[#allocation9] ss:$16 sps:$4 sm:$0xff]  }
  0x4b   :  { %511 = vmatpush1.bf16.msra.mxu0 %v1929_v7  ;;  %v1960_v29 = vld [vmem:[#allocation9 + $0x1e4] ss:$16 sps:$4 sm:$0xff]   ;;  %v1971_v30 = vld [vmem:[#allocation9 + $0x28] ss:$16 sps:$4 sm:$0xff]   ;;  %v1974_v31 = vld [vmem:[#allocation9 + $0xc] ss:$16 sps:$4 sm:$0xff]  }
  0x4c   :  { %512 = vmatprep.subr.bf16.mxu0 %v1930_v8  ;;  %552 = vmatpush1.bf16.msra.mxu1 %v1947_v14  ;;  %v1964_v32 = vld [vmem:[#allocation9 + $0x1e0] ss:$16 sps:$4 sm:$0xff]   ;;  %v1966_v33 = vld [vmem:[#allocation9 + $0x1c4] ss:$16 sps:$4 sm:$0xff]   ;;  %v1977_v34 = vld [vmem:[#allocation9 + $0x8] ss:$16 sps:$4 sm:$0xff]  }
  0x4d   :  { %553 = vmatprep.subr.bf16.mxu1 %v1950_v15  ;;  %v1980_v35 = vld [vmem:[#allocation9 + $0x1ec] ss:$16 sps:$4 sm:$0xff]   ;;  %v1970_v36 = vld [vmem:[#allocation9 + $0x1c0] ss:$16 sps:$4 sm:$0xff]   ;;  %v1972_v37 = vld [vmem:[#allocation9 + $0x1a4] ss:$16 sps:$4 sm:$0xff]  }
  0x4e   :  { %v1983_v38 = vld [vmem:[#allocation9 + $0x1e8] ss:$16 sps:$4 sm:$0xff]   ;;  %v1986_v39 = vld [vmem:[#allocation9 + $0x1cc] ss:$16 sps:$4 sm:$0xff]   ;;  %v94_v40 = vld [vmem:[#allocation6] sm:$0xff]  ;;  %s2418_s2 = smov [#allocation13]  }
  0x4f   :  { %513 = vmatpush1.bf16.msra.mxu0 %v1934_v11  ;;  %v1976_v41 = vld [vmem:[#allocation9 + $0x1a0] ss:$16 sps:$4 sm:$0xff]   ;;  %v99_v42 = vpack.c.bf16 %v94_v40, %v94_v40  ;;  %v1978_v43 = vld [vmem:[#allocation9 + $0x184] ss:$16 sps:$4 sm:$0xff]   ;;  %v1989_v44 = vld [vmem:[#allocation9 + $0x1c8] ss:$16 sps:$4 sm:$0xff]  }
  0x50   :  { %514 = vmatprep.subr.bf16.mxu0 %v1936_v12  ;;  %554 = vmatpush1.bf16.msra.mxu1 %v1953_v18  ;;  %v1992_v45 = vld [vmem:[#allocation9 + $0x1ac] ss:$16 sps:$4 sm:$0xff]   ;;  %v1982_v46 = vld [vmem:[#allocation9 + $0x180] ss:$16 sps:$4 sm:$0xff]   ;;  %v1984_v47 = vld [vmem:[#allocation9 + $0x164] ss:$16 sps:$4 sm:$0xff]  }
  0x51   :  { %555 = vmatprep.subr.bf16.mxu1 %v1956_v19  ;;  %538 = vmatprep.mubr.bf16.mxu0 %v99_v42  ;;  %v1995_v48 = vld [vmem:[#allocation9 + $0x1a8] ss:$16 sps:$4 sm:$0xff]   ;;  %v1998_v49 = vld [vmem:[#allocation9 + $0x18c] ss:$16 sps:$4 sm:$0xff]   ;;  %v1988_v50 = vld [vmem:[#allocation9 + $0x160] ss:$16 sps:$4 sm:$0xff]  }
  0x52   :  { %579 = vmatprep.mubr.bf16.mxu1 %v99_v42  ;;  %v1990_v51 = vld [vmem:[#allocation9 + $0x144] ss:$16 sps:$4 sm:$0xff]   ;;  %v2001_v52 = vld [vmem:[#allocation9 + $0x188] ss:$16 sps:$4 sm:$0xff]   ;;  %v2004_v53 = vld [vmem:[#allocation9 + $0x16c] ss:$16 sps:$4 sm:$0xff]  }
  0x53   :  { %515 = vmatpush1.bf16.msra.mxu0 %v1940_v16  ;;  %v1994_v54 = vld [vmem:[#allocation9 + $0x140] ss:$16 sps:$4 sm:$0xff]   ;;  %v1996_v55 = vld [vmem:[#allocation9 + $0x124] ss:$16 sps:$4 sm:$0xff]   ;;  %v2007_v56 = vld [vmem:[#allocation9 + $0x168] ss:$16 sps:$4 sm:$0xff]  }
  0x54   :  { %516 = vmatprep.subr.bf16.mxu0 %v1942_v17  ;;  %556 = vmatpush1.bf16.msra.mxu1 %v1959_v22  ;;  %v2008_v57 = vld [vmem:[#allocation9 + $0x14c] ss:$16 sps:$4 sm:$0xff]   ;;  %v2000_v58 = vld [vmem:[#allocation9 + $0x120] ss:$16 sps:$4 sm:$0xff]   ;;  %v2002_v59 = vld [vmem:[#allocation9 + $0x104] ss:$16 sps:$4 sm:$0xff]  }
  0x55   :  { %557 = vmatprep.subr.bf16.mxu1 %v1962_v23  ;;  %v2010_v60 = vld [vmem:[#allocation9 + $0x148] ss:$16 sps:$4 sm:$0xff]   ;;  %v2011_v61 = vld [vmem:[#allocation9 + $0x12c] ss:$16 sps:$4 sm:$0xff]   ;;  %v2006_v62 = vld [vmem:[#allocation9 + $0x100] ss:$16 sps:$4 sm:$0xff]  }
  0x56   :  { %v92_v63 = vld [vmem:[#allocation3] sm:$0xff]  ;;  %v2019_v1 = vld [vmem:[#allocation9 + $0x2e4] ss:$16 sps:$4 sm:$0xff]   ;;  %v2017_v3 = vld [vmem:[#allocation9 + $0x2e0] ss:$16 sps:$4 sm:$0xff]   ;;  %s1689_s4 = sshll.u32 %s2418_s2, 4  ;;  %s1690_s4 = int_to_ptr.vmem [resolvable:$true] %s1689_s4 }
  0x57   :  { %517 = vmatpush1.bf16.msra.mxu0 %v1946_v20  ;;  %v2013_v0 = vld [vmem:[#allocation9 + $0x128] ss:$16 sps:$4 sm:$0xff]   ;;  %v2014_v2 = vld [vmem:[#allocation9 + $0x10c] ss:$16 sps:$4 sm:$0xff]   ;;  %v98_v4 = vpack.c.bf16 %v92_v63, %v92_v63  ;;  %v2025_v6 = vld [vmem:[#allocation9 + $0x2c4] ss:$16 sps:$4 sm:$0xff]   ;;  %p2362_p12 = scmp.lt.s32.totalorder %s1690_s4, %s1690_s4 }
  0x58   :  { %518 = vmatprep.subr.bf16.mxu0 %v1948_v21  ;;  %558 = vmatpush1.bf16.msra.mxu1 %v1965_v26  ;;  %v2016_v5 = vld [vmem:[#allocation9 + $0x108] ss:$16 sps:$4 sm:$0xff]   ;;  %v2022_v7 = vld [vmem:[#allocation9 + $0x2ec] ss:$16 sps:$4 sm:$0xff]   ;;  %v2023_v8 = vld [vmem:[#allocation9 + $0x2c0] ss:$16 sps:$4 sm:$0xff]  }
  0x59   :  { %559 = vmatprep.subr.bf16.mxu1 %v1968_v27  ;;  %v2020_v9 = vld [vmem:[#allocation9 + $0x2e8] ss:$16 sps:$4 sm:$0xff]   ;;  %v2028_v10 = vld [vmem:[#allocation9 + $0x2cc] ss:$16 sps:$4 sm:$0xff]   ;;  %v2031_v12 = vld [vmem:[#allocation9 + $0x2a4] ss:$16 sps:$4 sm:$0xff]  }
  0x5a   :  { %v2026_v11 = vld [vmem:[#allocation9 + $0x2c8] ss:$16 sps:$4 sm:$0xff]   ;;  %v2034_v13 = vld [vmem:[#allocation9 + $0x2ac] ss:$16 sps:$4 sm:$0xff]   ;;  %v2029_v14 = vld [vmem:[#allocation9 + $0x2a0] ss:$16 sps:$4 sm:$0xff]  }
  0x5b   :  { %519 = vmatpush1.bf16.msra.mxu0 %v1952_v24  ;;  %v2032_v15 = vld [vmem:[#allocation9 + $0x2a8] ss:$16 sps:$4 sm:$0xff]   ;;  %v2037_v16 = vld [vmem:[#allocation9 + $0x284] ss:$16 sps:$4 sm:$0xff]   ;;  %v2040_v17 = vld [vmem:[#allocation9 + $0x28c] ss:$16 sps:$4 sm:$0xff]  }
  0x5c   :  { %520 = vmatprep.subr.bf16.mxu0 %v1954_v25  ;;  %560 = vmatpush1.bf16.msra.mxu1 %v1971_v30  ;;  %v2035_v18 = vld [vmem:[#allocation9 + $0x280] ss:$16 sps:$4 sm:$0xff]   ;;  %v2038_v19 = vld [vmem:[#allocation9 + $0x288] ss:$16 sps:$4 sm:$0xff]   ;;  %v2043_v20 = vld [vmem:[#allocation9 + $0x264] ss:$16 sps:$4 sm:$0xff]  }
  0x5d   :  { %561 = vmatprep.subr.bf16.mxu1 %v1974_v31  ;;  %v2046_v21 = vld [vmem:[#allocation9 + $0x26c] ss:$16 sps:$4 sm:$0xff]   ;;  %v2041_v22 = vld [vmem:[#allocation9 + $0x260] ss:$16 sps:$4 sm:$0xff]   ;;  %v2044_v23 = vld [vmem:[#allocation9 + $0x268] ss:$16 sps:$4 sm:$0xff]  }
  0x5e   :  { %v2049_v24 = vld [vmem:[#allocation9 + $0x244] ss:$16 sps:$4 sm:$0xff]   ;;  %v2052_v25 = vld [vmem:[#allocation9 + $0x24c] ss:$16 sps:$4 sm:$0xff]   ;;  %v2047_v26 = vld [vmem:[#allocation9 + $0x240] ss:$16 sps:$4 sm:$0xff]  }
  0x5f   :  { %521 = vmatpush1.bf16.msra.mxu0 %v1958_v28  ;;  %v2050_v27 = vld [vmem:[#allocation9 + $0x248] ss:$16 sps:$4 sm:$0xff]   ;;  %v2055_v28 = vld [vmem:[#allocation9 + $0x224] ss:$16 sps:$4 sm:$0xff]   ;;  %v2053_v30 = vld [vmem:[#allocation9 + $0x220] ss:$16 sps:$4 sm:$0xff]  }
  0x60   :  { %522 = vmatprep.subr.bf16.mxu0 %v1960_v29  ;;  %562 = vmatpush1.bf16.msra.mxu1 %v1977_v34  ;;  %v2058_v29 = vld [vmem:[#allocation9 + $0x22c] ss:$16 sps:$4 sm:$0xff]   ;;  %v2056_v31 = vld [vmem:[#allocation9 + $0x228] ss:$16 sps:$4 sm:$0xff]   ;;  %v2059_v34 = vld [vmem:[#allocation9 + $0x200] ss:$16 sps:$4 sm:$0xff]  }
  0x61   :  { %563 = vmatprep.subr.bf16.mxu1 %v1980_v35  ;;  %v2062_v35 = vld [vmem:[#allocation9 + $0x208] ss:$16 sps:$4 sm:$0xff]   ;;  %v2073_v40 = vld [vmem:[#allocation9 + $0x3c4] ss:$16 sps:$4 sm:$0xff]   ;;  %v2071_v42 = vld [vmem:[#allocation9 + $0x3c0] ss:$16 sps:$4 sm:$0xff]  }
  0x62   :  { %s2357_s27 = scalar_lea.vmem %s1690_s4, 384 }
  0x63   :  { %523 = vmatpush2.bf16.msra.mxu0 %v1964_v32  ;;  %v2061_v32 = vld [vmem:[#allocation9 + $0x204] ss:$16 sps:$4 sm:$0xff]   ;;  %p2358_p11 = scmp.ne.s32.totalorder %s1690_s4, %s2357_s27  ;;  %p2363_p13 = scmp.lt.s32.totalorder %s2357_s27, %s2357_s27 }
  0x64   :  { %524 = vmatprep.subr.bf16.mxu0 %v1966_v33  ;;  %564 = vmatpush2.bf16.msra.mxu1 %v1983_v38  ;;  %v2064_v33 = vld [vmem:[#allocation9 + $0x20c] ss:$16 sps:$4 sm:$0xff]   ;;  %v2065_v38 = vld [vmem:[#allocation9 + $0x3e0] ss:$16 sps:$4 sm:$0xff]  }
  0x65   :  { %565 = vmatprep.subr.bf16.mxu1 %v1986_v39  ;;  %v2068_v39 = vld [vmem:[#allocation9 + $0x3e8] ss:$16 sps:$4 sm:$0xff]   ;;  %p2364_p0 = por %p2363_p13, %p2362_p12 }
  0x67   :  { %525 = vmatpush2.bf16.msra.mxu0 %v1970_v36  ;;  %v2067_v36 = vld [vmem:[#allocation9 + $0x3e4] ss:$16 sps:$4 sm:$0xff]   ;;  %p2365_p1 = pnand %p2364_p0, %p2358_p11 }
  0x68   :  { %526 = vmatprep.subr.bf16.mxu0 %v1972_v37  ;;  %566 = vmatpush2.bf16.msra.mxu1 %v1989_v44  ;;  %v2070_v37 = vld [vmem:[#allocation9 + $0x3ec] ss:$16 sps:$4 sm:$0xff]   ;;  %v2079_v44 = vld [vmem:[#allocation9 + $0x3a4] ss:$16 sps:$4 sm:$0xff]  }
  0x69   :  { %567 = vmatprep.subr.bf16.mxu1 %v1992_v45  ;;  %v2082_v45 = vld [vmem:[#allocation9 + $0x3ac] ss:$16 sps:$4 sm:$0xff]  }
  0x6b   :  { %527 = vmatpush2.bf16.msra.mxu0 %v1976_v41  ;;  %v2076_v41 = vld [vmem:[#allocation9 + $0x3cc] ss:$16 sps:$4 sm:$0xff]  }
  0x6c   :  { %528 = vmatprep.subr.bf16.mxu0 %v1978_v43  ;;  %568 = vmatpush2.bf16.msra.mxu1 %v1995_v48  ;;  %v2074_v43 = vld [vmem:[#allocation9 + $0x3c8] ss:$16 sps:$4 sm:$0xff]   ;;  %v2085_v48 = vld [vmem:[#allocation9 + $0x384] ss:$16 sps:$4 sm:$0xff]  }
  0x6d   :  { %569 = vmatprep.subr.bf16.mxu1 %v1998_v49  ;;  %v2088_v49 = vld [vmem:[#allocation9 + $0x38c] ss:$16 sps:$4 sm:$0xff]  }
  0x6f   :  { %529 = vmatpush2.bf16.msra.mxu0 %v1982_v46  ;;  %v2077_v46 = vld [vmem:[#allocation9 + $0x3a0] ss:$16 sps:$4 sm:$0xff]  }
  0x70   :  { %530 = vmatprep.subr.bf16.mxu0 %v1984_v47  ;;  %570 = vmatpush2.bf16.msra.mxu1 %v2001_v52  ;;  %v2080_v47 = vld [vmem:[#allocation9 + $0x3a8] ss:$16 sps:$4 sm:$0xff]   ;;  %v2089_v52 = vld [vmem:[#allocation9 + $0x360] ss:$16 sps:$4 sm:$0xff]  }
  0x71   :  { %571 = vmatprep.subr.bf16.mxu1 %v2004_v53  ;;  %v2091_v53 = vld [vmem:[#allocation9 + $0x364] ss:$16 sps:$4 sm:$0xff]  }
  0x73   :  { %531 = vmatpush2.bf16.msra.mxu0 %v1988_v50  ;;  %v2083_v50 = vld [vmem:[#allocation9 + $0x380] ss:$16 sps:$4 sm:$0xff]  }
  0x74   :  { %532 = vmatprep.subr.bf16.mxu0 %v1990_v51  ;;  %572 = vmatpush2.bf16.msra.mxu1 %v2007_v56  ;;  %v2086_v51 = vld [vmem:[#allocation9 + $0x388] ss:$16 sps:$4 sm:$0xff]   ;;  %v2097_v56 = vld [vmem:[#allocation9 + $0x344] ss:$16 sps:$4 sm:$0xff]  }
  0x75   :  { %573 = vmatprep.subr.bf16.mxu1 %v2008_v57  ;;  %v2100_v57 = vld [vmem:[#allocation9 + $0x34c] ss:$16 sps:$4 sm:$0xff]  }
  0x77   :  { %533 = vmatpush2.bf16.msra.mxu0 %v1994_v54  ;;  %v2092_v54 = vld [vmem:[#allocation9 + $0x368] ss:$16 sps:$4 sm:$0xff]  }
  0x78   :  { %534 = vmatprep.subr.bf16.mxu0 %v1996_v55  ;;  %574 = vmatpush2.bf16.msra.mxu1 %v2010_v60  ;;  %v2094_v55 = vld [vmem:[#allocation9 + $0x36c] ss:$16 sps:$4 sm:$0xff]   ;;  %v2103_v60 = vld [vmem:[#allocation9 + $0x324] ss:$16 sps:$4 sm:$0xff]  }
  0x79   :  { %575 = vmatprep.subr.bf16.mxu1 %v2011_v61  ;;  %v2106_v61 = vld [vmem:[#allocation9 + $0x32c] ss:$16 sps:$4 sm:$0xff]  }
  0x7b   :  { %535 = vmatpush2.bf16.msra.mxu0 %v2000_v58  ;;  %v2095_v58 = vld [vmem:[#allocation9 + $0x340] ss:$16 sps:$4 sm:$0xff]  }
  0x7c   :  { %536 = vmatprep.subr.bf16.mxu0 %v2002_v59  ;;  %576 = vmatpush2.bf16.msra.mxu1 %v2013_v0  ;;  %v2098_v59 = vld [vmem:[#allocation9 + $0x348] ss:$16 sps:$4 sm:$0xff]   ;;  %v2101_v0 = vld [vmem:[#allocation9 + $0x320] ss:$16 sps:$4 sm:$0xff]  }
  0x7d   :  { %577 = vmatprep.subr.bf16.mxu1 %v2014_v2  ;;  %v2109_v2 = vld [vmem:[#allocation9 + $0x304] ss:$16 sps:$4 sm:$0xff]  }
  0x7f   :  { %537 = vmatpush2.bf16.msra.mxu0 %v2006_v62  ;;  %v617_v62 = vld [vmem:[#allocation6 + $0x8] sm:$0xff] }
  0x80   :  { %1031 = vmatprep.subr.bf16.mxu0 %v2019_v1  ;;  %578 = vmatpush2.bf16.msra.mxu1 %v2016_v5  ;;  %v622_v63 = vpack.c.bf16 %v617_v62, %v617_v62  ;;  %v2104_v1 = vld [vmem:[#allocation9 + $0x328] ss:$16 sps:$4 sm:$0xff]   ;;  %v2136_v62 = vld [vmem:[#allocation9 + $0x48c] ss:$16 sps:$4 sm:$0xff]  }
  0x81   :  { %1072 = vmatprep.subr.bf16.mxu1 %v2022_v7  ;;  %v2110_v5 = vld [vmem:[#allocation9 + $0x308] ss:$16 sps:$4 sm:$0xff]   ;;  %v2118_v7 = vld [vmem:[#allocation9 + $0x4ec] ss:$16 sps:$4 sm:$0xff]  }
  0x82   :  { %539 = vmatmul.mubr.bf16.vlgmr.msra.gmra.mxu0 %v98_v4 }
  0x83   :  { %1032 = vmatpush1.bf16.msra.mxu0 %v2017_v3  ;;  %580 = vmatmul.mubr.bf16.vlgmr.msra.gmra.mxu1 %v98_v4  ;;  %v2112_v3 = vld [vmem:[#allocation9 + $0x30c] ss:$16 sps:$4 sm:$0xff]   ;;  %v2107_v4 = vld [vmem:[#allocation9 + $0x300] ss:$16 sps:$4 sm:$0xff]  }
  0x84   :  { %1033 = vmatprep.subr.bf16.mxu0 %v2025_v6  ;;  %1073 = vmatpush1.bf16.msra.mxu1 %v2020_v9  ;;  %v2115_v6 = vld [vmem:[#allocation9 + $0x4e4] ss:$16 sps:$4 sm:$0xff]  }
  0x85   :  { %1074 = vmatprep.subr.bf16.mxu1 %v2028_v10  ;;  %1063 = vmatprep.mubr.bf16.mxu0 %v622_v63 }
  0x86   :  { %1104 = vmatprep.mubr.bf16.mxu1 %v622_v63  ;;  %v2131_v63 = vld [vmem:[#allocation9 + $0x480] ss:$16 sps:$4 sm:$0xff]  }
  0x87   :  { %1034 = vmatpush1.bf16.msra.mxu0 %v2023_v8  ;;  %v166_v8 = vlaneseq }
  0x88   :  { %1075 = vmatpush1.bf16.msra.mxu1 %v2026_v11  ;;  %1035 = vmatprep.subr.bf16.mxu0 %v2031_v12  ;;  %v164_v11 = vld [vmem:[#allocation11] sm:$0xf] }
  0x89   :  { %1076 = vmatprep.subr.bf16.mxu1 %v2034_v13  ;;  %v167_v9 = vshrl.u32 %v166_v8, 7  ;;  %v2146_v8 = vld [vmem:[#allocation9 + $0x448] ss:$16 sps:$4 sm:$0xff]  }
  0x8b   :  { %1036 = vmatpush1.bf16.msra.mxu0 %v2029_v14  ;;  %v2476_v10 = vsub.s32 0, %v167_v9  ;;  %v2478_v12 = vsub.s32 1, %v167_v9 }
  0x8c   :  { %1077 = vmatpush1.bf16.msra.mxu1 %v2032_v15  ;;  %1037 = vmatprep.subr.bf16.mxu0 %v2037_v16 }
  0x8d   :  { %1078 = vmatprep.subr.bf16.mxu1 %v2040_v17  ;;  %v169_v13 = vrot.slane %v164_v11, %v2476_v10  ;;  %v173_v14 = vrot.slane %v164_v11, %v2478_v12 }
  0x8f   :  { %1038 = vmatpush1.bf16.msra.mxu0 %v2035_v18 }
  0x90   :  { %1079 = vmatpush1.bf16.msra.mxu1 %v2038_v19  ;;  %1039 = vmatprep.subr.bf16.mxu0 %v2043_v20 }
  0x91   :  { %1080 = vmatprep.subr.bf16.mxu1 %v2046_v21  ;;  %v2482_v21 = vsub.s32 3, %v167_v9 }
  0x93   :  { %1040 = vmatpush1.bf16.msra.mxu0 %v2041_v22 }
  0x94   :  { %1081 = vmatpush1.bf16.msra.mxu1 %v2044_v23  ;;  %1041 = vmatprep.subr.bf16.mxu0 %v2049_v24 }
  0x95   :  { %1082 = vmatprep.subr.bf16.mxu1 %v2052_v25  ;;  %v2484_v25 = vsub.s32 2, %v167_v9  ;;  %v2151_v9 = vld [vmem:[#allocation9 + $0x424] ss:$16 sps:$4 sm:$0xff]  }
  0x97   :  { %1042 = vmatpush1.bf16.msra.mxu0 %v2047_v26 }
  0x98   :  { %1083 = vmatpush1.bf16.msra.mxu1 %v2050_v27  ;;  %1043 = vmatprep.subr.bf16.mxu0 %v2055_v28  ;;  %v181_v27 = vrot.slane %v164_v11, %v2482_v21 }
  0x99   :  { %1084 = vmatprep.subr.bf16.mxu1 %v2058_v29  ;;  %v177_v29 = vrot.slane %v164_v11, %v2484_v25  ;;  %v2154_v11 = vld [vmem:[#allocation9 + $0x42c] ss:$16 sps:$4 sm:$0xff]  }
  0x9b   :  { %1044 = vmatpush1.bf16.msra.mxu0 %v2053_v30 }
  0x9c   :  { %1085 = vmatpush1.bf16.msra.mxu1 %v2056_v31  ;;  %1045 = vmatprep.subr.bf16.mxu0 %v2061_v32 }
  0x9d   :  { %1086 = vmatprep.subr.bf16.mxu1 %v2064_v33 }
  0x9f   :  { %1046 = vmatpush1.bf16.msra.mxu0 %v2059_v34 }
  0xa0   :  { %1087 = vmatpush1.bf16.msra.mxu1 %v2062_v35  ;;  %1047 = vmatprep.subr.bf16.mxu0 %v2067_v36 }
  0xa1   :  { %1088 = vmatprep.subr.bf16.mxu1 %v2070_v37 }
  0xa3   :  { %1048 = vmatpush2.bf16.msra.mxu0 %v2065_v38 }
  0xa4   :  { %1089 = vmatpush2.bf16.msra.mxu1 %v2068_v39  ;;  %1049 = vmatprep.subr.bf16.mxu0 %v2073_v40 }
  0xa5   :  { %1090 = vmatprep.subr.bf16.mxu1 %v2076_v41  ;;  %v607_v41 = vld [vmem:[#allocation8] sm:$0xff] }
  0xa7   :  { %1050 = vmatpush2.bf16.msra.mxu0 %v2071_v42 }
  0xa8   :  { %1091 = vmatpush2.bf16.msra.mxu1 %v2074_v43  ;;  %1051 = vmatprep.subr.bf16.mxu0 %v2079_v44 }
  0xa9   :  { %1092 = vmatprep.subr.bf16.mxu1 %v2082_v45 }
  0xab   :  { %1052 = vmatpush2.bf16.msra.mxu0 %v2077_v46 }
  0xac   :  { %1093 = vmatpush2.bf16.msra.mxu1 %v2080_v47  ;;  %1053 = vmatprep.subr.bf16.mxu0 %v2085_v48 }
  0xad   :  { %1094 = vmatprep.subr.bf16.mxu1 %v2088_v49 }
  0xaf   :  { %1054 = vmatpush2.bf16.msra.mxu0 %v2083_v50  ;;  %v2113_v50 = vld [vmem:[#allocation9 + $0x4e0] ss:$16 sps:$4 sm:$0xff]  }
  0xb0   :  { %1095 = vmatpush2.bf16.msra.mxu1 %v2086_v51  ;;  %1055 = vmatprep.subr.bf16.mxu0 %v2091_v53  ;;  %v2116_v51 = vld [vmem:[#allocation9 + $0x4e8] ss:$16 sps:$4 sm:$0xff]   ;;  %v2121_v53 = vld [vmem:[#allocation9 + $0x4c4] ss:$16 sps:$4 sm:$0xff]  }
  0xb1   :  { %1096 = vmatprep.subr.bf16.mxu1 %v2094_v55  ;;  %v2119_v55 = vld [vmem:[#allocation9 + $0x4c0] ss:$16 sps:$4 sm:$0xff]  }
  0xb3   :  { %1056 = vmatpush2.bf16.msra.mxu0 %v2089_v52 }
  0xb4   :  { %1097 = vmatpush2.bf16.msra.mxu1 %v2092_v54  ;;  %1057 = vmatprep.subr.bf16.mxu0 %v2097_v56  ;;  %v2124_v54 = vld [vmem:[#allocation9 + $0x4cc] ss:$16 sps:$4 sm:$0xff]   ;;  %v2122_v56 = vld [vmem:[#allocation9 + $0x4c8] ss:$16 sps:$4 sm:$0xff]  }
  0xb5   :  { %1098 = vmatprep.subr.bf16.mxu1 %v2100_v57  ;;  %v2127_v57 = vld [vmem:[#allocation9 + $0x4a4] ss:$16 sps:$4 sm:$0xff]  }
  0xb7   :  { %1058 = vmatpush2.bf16.msra.mxu0 %v2095_v58  ;;  %v2130_v58 = vld [vmem:[#allocation9 + $0x4ac] ss:$16 sps:$4 sm:$0xff]  }
  0xb8   :  { %1099 = vmatpush2.bf16.msra.mxu1 %v2098_v59  ;;  %1059 = vmatprep.subr.bf16.mxu0 %v2103_v60  ;;  %v2125_v59 = vld [vmem:[#allocation9 + $0x4a0] ss:$16 sps:$4 sm:$0xff]   ;;  %v2128_v60 = vld [vmem:[#allocation9 + $0x4a8] ss:$16 sps:$4 sm:$0xff]  }
  0xb9   :  { %1100 = vmatprep.subr.bf16.mxu1 %v2106_v61  ;;  %v2133_v61 = vld [vmem:[#allocation9 + $0x484] ss:$16 sps:$4 sm:$0xff]  }
  0xbb   :  { %1060 = vmatpush2.bf16.msra.mxu0 %v2101_v0  ;;  %v2134_v0 = vld [vmem:[#allocation9 + $0x488] ss:$16 sps:$4 sm:$0xff]  }
  0xbc   :  { %1101 = vmatpush2.bf16.msra.mxu1 %v2104_v1  ;;  %1061 = vmatprep.subr.bf16.mxu0 %v2109_v2  ;;  %v2139_v1 = vld [vmem:[#allocation9 + $0x464] ss:$16 sps:$4 sm:$0xff]   ;;  %v2142_v2 = vld [vmem:[#allocation9 + $0x46c] ss:$16 sps:$4 sm:$0xff]  }
  0xbd   :  { %1102 = vmatprep.subr.bf16.mxu1 %v2112_v3  ;;  %v2137_v3 = vld [vmem:[#allocation9 + $0x460] ss:$16 sps:$4 sm:$0xff]  }
  0xbf   :  { %1062 = vmatpush2.bf16.msra.mxu0 %v2107_v4  ;;  %v2140_v4 = vld [vmem:[#allocation9 + $0x468] ss:$16 sps:$4 sm:$0xff]  }
  0xc0   :  { %1103 = vmatpush2.bf16.msra.mxu1 %v2110_v5  ;;  %1559 = vmatprep.subr.bf16.mxu0 %v2115_v6  ;;  %v2145_v5 = vld [vmem:[#allocation9 + $0x444] ss:$16 sps:$4 sm:$0xff]   ;;  %v2148_v6 = vld [vmem:[#allocation9 + $0x44c] ss:$16 sps:$4 sm:$0xff]  }
  0xc1   :  { %1600 = vmatprep.subr.bf16.mxu1 %v2118_v7  ;;  %v2143_v7 = vld [vmem:[#allocation9 + $0x440] ss:$16 sps:$4 sm:$0xff]  }
 0x142   :  { %v540_v15 = vpop.f32.mrf.mxu0 }
 0x143   :  { %v541_v16 = vadd.f32 %v540_v15, %v169_v13  ;;  %v581_v23 = vpop.f32.mrf.mxu1  ;;  %v2149_v13 = vld [vmem:[#allocation9 + $0x420] ss:$16 sps:$4 sm:$0xff]   ;;  %v2157_v15 = vld [vmem:[#allocation9 + $0x404] ss:$16 sps:$4 sm:$0xff]  }
 0x144   :  { %v542_v17 = vpop.f32.mrf.mxu0  ;;  %v582_v32 = vadd.f32 %v581_v23, %v177_v29  ;;  %v2164_v23 = vld [vmem:[#allocation9 + $0x5e8] ss:$16 sps:$4 sm:$0xff]   ;;  %v2175_v29 = vld [vmem:[#allocation9 + $0x5a4] ss:$16 sps:$4 sm:$0xff]  }
 0x145   :  { %v1771_v18 = vmul.f32 -1.442695, %v541_v16  ;;  %v543_v19 = vadd.f32 %v542_v17, %v173_v14  ;;  %v583_v26 = vpop.f32.mrf.mxu1  ;;  %v2152_v14 = vld [vmem:[#allocation9 + $0x428] ss:$16 sps:$4 sm:$0xff]   ;;  %v2160_v16 = vld [vmem:[#allocation9 + $0x40c] ss:$16 sps:$4 sm:$0xff]  }
 0x146   :  { %v544_v20 = vpop.f32.mrf.mxu0  ;;  %v584_v31 = vadd.f32 %v583_v26, %v181_v27  ;;  %v2155_v17 = vld [vmem:[#allocation9 + $0x400] ss:$16 sps:$4 sm:$0xff]   ;;  %v2172_v26 = vld [vmem:[#allocation9 + $0x5cc] ss:$16 sps:$4 sm:$0xff]  }
 0x147   :  { %2209 = vpow2.f32 %v1771_v18  ;;  %v1772_v22 = vmul.f32 -1.442695, %v543_v19  ;;  %v585_v28 = vpop.f32.mrf.mxu1  ;;  %v2158_v18 = vld [vmem:[#allocation9 + $0x408] ss:$16 sps:$4 sm:$0xff]   ;;  %v2163_v19 = vld [vmem:[#allocation9 + $0x5e4] ss:$16 sps:$4 sm:$0xff]  }
 0x148   :  { %v545_v24 = vpop.f32.mrf.mxu0  ;;  %v1773_v33 = vmul.f32 -1.442695, %v584_v31  ;;  %v2166_v20 = vld [vmem:[#allocation9 + $0x5ec] ss:$16 sps:$4 sm:$0xff]   ;;  %v2167_v27 = vld [vmem:[#allocation9 + $0x5c0] ss:$16 sps:$4 sm:$0xff]  }
 0x149   :  { %2211 = vpow2.f32 %v1772_v22  ;;  %v586_v30 = vpop.f32.mrf.mxu1  ;;  %v2161_v22 = vld [vmem:[#allocation9 + $0x5e0] ss:$16 sps:$4 sm:$0xff]   ;;  %v2169_v24 = vld [vmem:[#allocation9 + $0x5c4] ss:$16 sps:$4 sm:$0xff]   ;;  %v2170_v28 = vld [vmem:[#allocation9 + $0x5c8] ss:$16 sps:$4 sm:$0xff]  }
 0x14a   :  { %2213 = vtanh.f32 %v582_v32  ;;  %v2178_v30 = vld [vmem:[#allocation9 + $0x5ac] ss:$16 sps:$4 sm:$0xff]   ;;  %v2173_v31 = vld [vmem:[#allocation9 + $0x5a0] ss:$16 sps:$4 sm:$0xff]   ;;  %v2176_v32 = vld [vmem:[#allocation9 + $0x5a8] ss:$16 sps:$4 sm:$0xff]  }
 0x14b   :  { %2215 = vpow2.f32 %v1773_v33  ;;  %v2181_v33 = vld [vmem:[#allocation9 + $0x584] ss:$16 sps:$4 sm:$0xff]  }
 0x154   :  { %v2210_v34 = vpop.eup %2209 }
 0x155   :  { %v591_v35 = vadd.f32 1.0, %v2210_v34  ;;  %v2184_v34 = vld [vmem:[#allocation9 + $0x58c] ss:$16 sps:$4 sm:$0xff]  }
 0x156   :  { %v2212_v36 = vpop.eup %2211 }
 0x157   :  { %2217 = vrcp.f32 %v591_v35  ;;  %v597_v37 = vadd.f32 1.0, %v2212_v36  ;;  %v2214_v38 = vpop.eup %2213  ;;  %v2179_v35 = vld [vmem:[#allocation9 + $0x580] ss:$16 sps:$4 sm:$0xff]   ;;  %v2182_v36 = vld [vmem:[#allocation9 + $0x588] ss:$16 sps:$4 sm:$0xff]  }
 0x158   :  { %v2216_v39 = vpop.eup %2215 }
 0x159   :  { %2219 = vrcp.f32 %v597_v37  ;;  %v604_v43 = vadd.f32 1.0, %v2216_v39  ;;  %v2185_v37 = vld [vmem:[#allocation9 + $0x560] ss:$16 sps:$4 sm:$0xff]   ;;  %v2188_v39 = vld [vmem:[#allocation9 + $0x568] ss:$16 sps:$4 sm:$0xff]  }
 0x15b   :  { %2221 = vrcp.f32 %v604_v43  ;;  %v2191_v43 = vld [vmem:[#allocation9 + $0x540] ss:$16 sps:$4 sm:$0xff]  }
 0x164   :  { %v2218_v40 = vpop.eup %2217 }
 0x165   :  { %v609_v45 = vmul.f32 %v2218_v40, %v2214_v38  ;;  %v2187_v38 = vld [vmem:[#allocation9 + $0x564] ss:$16 sps:$4 sm:$0xff]   ;;  %v2190_v40 = vld [vmem:[#allocation9 + $0x56c] ss:$16 sps:$4 sm:$0xff]  }
 0x166   :  { %v2220_v42 = vpop.eup %2219 }
 0x167   :  { %v608_v44 = vmul.f32 %v2220_v42, %v607_v41  ;;  %v2193_v41 = vld [vmem:[#allocation9 + $0x544] ss:$16 sps:$4 sm:$0xff]   ;;  %v2196_v42 = vld [vmem:[#allocation9 + $0x54c] ss:$16 sps:$4 sm:$0xff]  }
 0x168   :  { %v2222_v47 = vpop.eup %2221 }
 0x169   :  { %v610_v46 = vadd.f32 %v609_v45, %v608_v44  ;;  %v2194_v44 = vld [vmem:[#allocation9 + $0x548] ss:$16 sps:$4 sm:$0xff]   ;;  %v2199_v45 = vld [vmem:[#allocation9 + $0x524] ss:$16 sps:$4 sm:$0xff]  }
 0x16b   :  { %2223 = vtanh.f32 %v610_v46  ;;  %613 = vst [vmem:[#allocation13] sm:$0xff] %v610_v46  ;;  %v2202_v46 = vld [vmem:[#allocation9 + $0x52c] ss:$16 sps:$4 sm:$0xff]  }
 0x178   :  { %v2224_v48 = vpop.eup %2223 }
 0x179   :  { %v612_v49 = vmul.f32 %v2224_v48, %v2222_v47  ;;  %v1145_v47 = vld [vmem:[#allocation6 + $0x10] sm:$0xff] }
 0x17a   :  { %v1150_v48 = vpack.c.bf16 %v1145_v47, %v1145_v47 }
 0x17b   :  { %v621_v52 = vpack.c.bf16 %v612_v49, %v612_v49  ;;  %614 = vst [vmem:[#allocation12] sm:$0xff] %v612_v49  ;;  %v2197_v49 = vld [vmem:[#allocation9 + $0x520] ss:$16 sps:$4 sm:$0xff]  }
 0x17d   :  { %1064 = vmatmul.mubr.bf16.vlgmr.msra.gmra.mxu0 %v621_v52  ;;  %1105 = vmatmul.mubr.bf16.vlgmr.msra.gmra.mxu1 %v621_v52  ;;  %v2208_v52 = vld [vmem:[#allocation9 + $0x50c] ss:$16 sps:$4 sm:$0xff]  }
 0x17e   :  { %1560 = vmatpush1.bf16.msra.mxu0 %v2113_v50  ;;  %1601 = vmatpush1.bf16.msra.mxu1 %v2116_v51  ;;  %v2200_v50 = vld [vmem:[#allocation9 + $0x528] ss:$16 sps:$4 sm:$0xff]   ;;  %v2205_v51 = vld [vmem:[#allocation9 + $0x504] ss:$16 sps:$4 sm:$0xff]  }
 0x17f   :  { %1561 = vmatprep.subr.bf16.mxu0 %v2121_v53  ;;  %1602 = vmatprep.subr.bf16.mxu1 %v2124_v54  ;;  %v2203_v53 = vld [vmem:[#allocation9 + $0x500] ss:$16 sps:$4 sm:$0xff]   ;;  %v2206_v54 = vld [vmem:[#allocation9 + $0x508] ss:$16 sps:$4 sm:$0xff]  }
 0x180   :  { %1591 = vmatprep.mubr.bf16.mxu0 %v1150_v48  ;;  %1632 = vmatprep.mubr.bf16.mxu1 %v1150_v48 }
 0x182   :  { %1562 = vmatpush1.bf16.msra.mxu0 %v2119_v55  ;;  %1603 = vmatpush1.bf16.msra.mxu1 %v2122_v56  ;;  %v689_v55 = vld [vmem:[#allocation11 + $0x4] sm:$0xf] }
 0x183   :  { %1563 = vmatprep.subr.bf16.mxu0 %v2127_v57  ;;  %1604 = vmatprep.subr.bf16.mxu1 %v2130_v58  ;;  %v694_v56 = vrot.slane %v689_v55, %v2476_v10  ;;  %v698_v57 = vrot.slane %v689_v55, %v2478_v12 }
 0x186   :  { %1564 = vmatpush1.bf16.msra.mxu0 %v2125_v59  ;;  %1605 = vmatpush1.bf16.msra.mxu1 %v2128_v60 }
 0x187   :  { %1565 = vmatprep.subr.bf16.mxu0 %v2133_v61  ;;  %1606 = vmatprep.subr.bf16.mxu1 %v2136_v62 }
 0x18a   :  { %1566 = vmatpush1.bf16.msra.mxu0 %v2131_v63  ;;  %1607 = vmatpush1.bf16.msra.mxu1 %v2134_v0 }
 0x18b   :  { %1567 = vmatprep.subr.bf16.mxu0 %v2139_v1  ;;  %1608 = vmatprep.subr.bf16.mxu1 %v2142_v2 }
 0x18e   :  { %1568 = vmatpush1.bf16.msra.mxu0 %v2137_v3  ;;  %1609 = vmatpush1.bf16.msra.mxu1 %v2140_v4 }
 0x18f   :  { %1569 = vmatprep.subr.bf16.mxu0 %v2145_v5  ;;  %1610 = vmatprep.subr.bf16.mxu1 %v2148_v6  ;;  %v706_v6 = vrot.slane %v689_v55, %v2482_v21 }
 0x192   :  { %1570 = vmatpush1.bf16.msra.mxu0 %v2143_v7  ;;  %1611 = vmatpush1.bf16.msra.mxu1 %v2146_v8  ;;  %v702_v8 = vrot.slane %v689_v55, %v2484_v25 }
 0x193   :  { %1571 = vmatprep.subr.bf16.mxu0 %v2151_v9  ;;  %1612 = vmatprep.subr.bf16.mxu1 %v2154_v11 }
 0x196   :  { %1572 = vmatpush1.bf16.msra.mxu0 %v2149_v13  ;;  %1613 = vmatpush1.bf16.msra.mxu1 %v2152_v14 }
 0x197   :  { %1573 = vmatprep.subr.bf16.mxu0 %v2157_v15  ;;  %1614 = vmatprep.subr.bf16.mxu1 %v2160_v16 }
 0x19a   :  { %1574 = vmatpush1.bf16.msra.mxu0 %v2155_v17  ;;  %1615 = vmatpush1.bf16.msra.mxu1 %v2158_v18 }
 0x19b   :  { %1575 = vmatprep.subr.bf16.mxu0 %v2163_v19  ;;  %1616 = vmatprep.subr.bf16.mxu1 %v2166_v20  ;;  %v1133_v19 = vld [vmem:[#allocation8 + $0x8] sm:$0xff] }
 0x19e   :  { %1576 = vmatpush2.bf16.msra.mxu0 %v2161_v22  ;;  %1617 = vmatpush2.bf16.msra.mxu1 %v2164_v23 }
 0x19f   :  { %1577 = vmatprep.subr.bf16.mxu0 %v2169_v24  ;;  %1618 = vmatprep.subr.bf16.mxu1 %v2172_v26 }
 0x1a2   :  { %1578 = vmatpush2.bf16.msra.mxu0 %v2167_v27  ;;  %1619 = vmatpush2.bf16.msra.mxu1 %v2170_v28 }
 0x1a3   :  { %1579 = vmatprep.subr.bf16.mxu0 %v2175_v29  ;;  %1620 = vmatprep.subr.bf16.mxu1 %v2178_v30 }
 0x1a6   :  { %1580 = vmatpush2.bf16.msra.mxu0 %v2173_v31  ;;  %1621 = vmatpush2.bf16.msra.mxu1 %v2176_v32  ;;  %v1217_v32 = vld [vmem:[#allocation11 + $0x8] sm:$0xf] }
 0x1a7   :  { %1581 = vmatprep.subr.bf16.mxu0 %v2181_v33  ;;  %1622 = vmatprep.subr.bf16.mxu1 %v2184_v34  ;;  %v1222_v33 = vrot.slane %v1217_v32, %v2476_v10  ;;  %v1226_v34 = vrot.slane %v1217_v32, %v2478_v12  ;;  %v1234_v47 = vrot.slane %v1217_v32, %v2482_v21 }
 0x1a8   :  { %v1230_v10 = vrot.slane %v1217_v32, %v2484_v25 }
 0x1aa   :  { %1582 = vmatpush2.bf16.msra.mxu0 %v2179_v35  ;;  %1623 = vmatpush2.bf16.msra.mxu1 %v2182_v36 }
 0x1ab   :  { %1583 = vmatprep.subr.bf16.mxu0 %v2187_v38  ;;  %1624 = vmatprep.subr.bf16.mxu1 %v2190_v40 }
 0x1ae   :  { %1584 = vmatpush2.bf16.msra.mxu0 %v2185_v37  ;;  %1625 = vmatpush2.bf16.msra.mxu1 %v2188_v39 }
 0x1af   :  { %1585 = vmatprep.subr.bf16.mxu0 %v2193_v41  ;;  %1626 = vmatprep.subr.bf16.mxu1 %v2196_v42 }
 0x1b2   :  { %1586 = vmatpush2.bf16.msra.mxu0 %v2191_v43  ;;  %1627 = vmatpush2.bf16.msra.mxu1 %v2194_v44 }
 0x1b3   :  { %1587 = vmatprep.subr.bf16.mxu0 %v2199_v45  ;;  %1628 = vmatprep.subr.bf16.mxu1 %v2202_v46 }
 0x1b6   :  { %1588 = vmatpush2.bf16.msra.mxu0 %v2197_v49  ;;  %1629 = vmatpush2.bf16.msra.mxu1 %v2200_v50 }
 0x1b7   :  { %1589 = vmatprep.subr.bf16.mxu0 %v2205_v51  ;;  %1630 = vmatprep.subr.bf16.mxu1 %v2208_v52 }
 0x1ba   :  { %1590 = vmatpush2.bf16.msra.mxu0 %v2203_v53  ;;  %1631 = vmatpush2.bf16.msra.mxu1 %v2206_v54 }
 0x23d   :  { %v1065_v58 = vpop.f32.mrf.mxu0  ;;  %v1106_v59 = vpop.f32.mrf.mxu1 }
 0x23e   :  { %v1066_v60 = vadd.f32 %v1065_v58, %v694_v56  ;;  %v1107_v13 = vadd.f32 %v1106_v59, %v702_v8  ;;  %v1661_v56 = vld [vmem:[#allocation8 + $0x10] sm:$0xff] }
 0x23f   :  { %v1067_v61 = vpop.f32.mrf.mxu0  ;;  %v1108_v62 = vpop.f32.mrf.mxu1 }
 0x240   :  { %v1838_v63 = vmul.f32 -1.442695, %v1066_v60  ;;  %v1068_v0 = vadd.f32 %v1067_v61, %v698_v57  ;;  %v1109_v7 = vadd.f32 %v1108_v62, %v706_v6 }
 0x241   :  { %v1069_v1 = vpop.f32.mrf.mxu0  ;;  %v1110_v2 = vpop.f32.mrf.mxu1 }
 0x242   :  { %2225 = vpow2.f32 %v1838_v63  ;;  %v1839_v3 = vmul.f32 -1.442695, %v1068_v0  ;;  %v1840_v9 = vmul.f32 -1.442695, %v1109_v7 }
 0x243   :  { %v1070_v4 = vpop.f32.mrf.mxu0  ;;  %v1111_v5 = vpop.f32.mrf.mxu1 }
 0x244   :  { %2227 = vpow2.f32 %v1839_v3 }
 0x245   :  { %2229 = vpow2.f32 %v1840_v9 }
 0x24f   :  { %v2226_v11 = vpop.eup %2225 }
 0x250   :  { %v1116_v14 = vadd.f32 1.0, %v2226_v11 }
 0x251   :  { %v2228_v15 = vpop.eup %2227 }
 0x252   :  { %2231 = vrcp.f32 %v1116_v14  ;;  %v1122_v16 = vadd.f32 1.0, %v2228_v15  ;;  %v2230_v17 = vpop.eup %2229 }
 0x253   :  { %2233 = vtanh.f32 %v1107_v13  ;;  %v1129_v23 = vadd.f32 1.0, %v2230_v17 }
 0x254   :  { %2235 = vrcp.f32 %v1122_v16 }
 0x255   :  { %2237 = vrcp.f32 %v1129_v23 }
 0x25f   :  { %v2232_v18 = vpop.eup %2231 }
 0x260   :  { %v2234_v20 = vpop.eup %2233 }
 0x261   :  { %v2236_v22 = vpop.eup %2235  ;;  %v1135_v24 = vmul.f32 %v2234_v20, %v2232_v18 }
 0x262   :  { %v1134_v26 = vmul.f32 %v2236_v22, %v1133_v19  ;;  %v2238_v28 = vpop.eup %2237 }
 0x264   :  { %v1136_v27 = vadd.f32 %v1135_v24, %v1134_v26 }
 0x266   :  { %1140 = vst [vmem:[#allocation13 + $0x8] sm:$0xff] %v1136_v27  ;;  %2239 = vtanh.f32 %v1136_v27 }
 0x273   :  { %v2240_v29 = vpop.eup %2239 }
 0x274   :  { %v1138_v30 = vmul.f32 %v2240_v29, %v2238_v28 }
 0x276   :  { %v1149_v31 = vpack.c.bf16 %v1138_v30, %v1138_v30  ;;  %1142 = vst [vmem:[#allocation12 + $0x8] sm:$0xff] %v1138_v30 }
 0x278   :  { %1592 = vmatmul.mubr.bf16.vlgmr.msra.gmra.mxu0 %v1149_v31  ;;  %1633 = vmatmul.mubr.bf16.vlgmr.msra.gmra.mxu1 %v1149_v31 }
 0x338   :  { %v1593_v35 = vpop.f32.mrf.mxu0  ;;  %v1634_v36 = vpop.f32.mrf.mxu1 }
 0x339   :  { %v1594_v37 = vadd.f32 %v1593_v35, %v1222_v33  ;;  %v1635_v50 = vadd.f32 %v1634_v36, %v1230_v10 }
 0x33a   :  { %v1595_v38 = vpop.f32.mrf.mxu0  ;;  %v1636_v39 = vpop.f32.mrf.mxu1 }
 0x33b   :  { %v1905_v40 = vmul.f32 -1.442695, %v1594_v37  ;;  %v1596_v41 = vadd.f32 %v1595_v38, %v1226_v34  ;;  %v1637_v48 = vadd.f32 %v1636_v39, %v1234_v47 }
 0x33c   :  { %v1597_v42 = vpop.f32.mrf.mxu0  ;;  %v1638_v43 = vpop.f32.mrf.mxu1 }
 0x33d   :  { %2241 = vpow2.f32 %v1905_v40  ;;  %v1906_v44 = vmul.f32 -1.442695, %v1596_v41  ;;  %v1907_v12 = vmul.f32 -1.442695, %v1637_v48 }
 0x33e   :  { %v1598_v45 = vpop.f32.mrf.mxu0  ;;  %v1639_v46 = vpop.f32.mrf.mxu1 }
 0x33f   :  { %2243 = vpow2.f32 %v1906_v44 }
 0x340   :  { %2245 = vpow2.f32 %v1907_v12 }
 0x34a   :  { %v2242_v49 = vpop.eup %2241 }
 0x34b   :  { %v1644_v51 = vadd.f32 1.0, %v2242_v49 }
 0x34c   :  { %v2244_v52 = vpop.eup %2243 }
 0x34d   :  { %2247 = vrcp.f32 %v1644_v51  ;;  %v1650_v53 = vadd.f32 1.0, %v2244_v52  ;;  %v2246_v54 = vpop.eup %2245 }
 0x34e   :  { %2249 = vtanh.f32 %v1635_v50  ;;  %v1657_v59 = vadd.f32 1.0, %v2246_v54 }
 0x34f   :  { %2251 = vrcp.f32 %v1650_v53 }
 0x350   :  { %2253 = vrcp.f32 %v1657_v59 }
 0x35a   :  { %v2248_v55 = vpop.eup %2247 }
 0x35b   :  { %v2250_v57 = vpop.eup %2249 }
 0x35c   :  { %v2252_v58 = vpop.eup %2251  ;;  %v1663_v21 = vmul.f32 %v2250_v57, %v2248_v55 }
 0x35d   :  { %v1662_v25 = vmul.f32 %v2252_v58, %v1661_v56 }
 0x35f   :  { %v1664_v60 = vadd.f32 %v1663_v21, %v1662_v25 }
 0x361   :  { %1668 = vst [vmem:[#allocation13 + $0x10] sm:$0xff] %v1664_v60  ;;  %2255 = vtanh.f32 %v1664_v60 }
 0x362   :  { %2368 = shalt.err (!%p2365_p1)
}
 0x363   :  { %1695 = dma.vmem_to_hbm [thread:$0]  %s1690_s4, 384, %s2514_s6, [#allocation14], %s2408_s24, %s2408_s24, %s2409_s25   ;;  %v2254_v61 = vpop.eup %2253 }
 0x364   :  { %s2419_s30 = smov [#allocation12]  }
 0x365   :  { %s1677_s7 = sshll.u32 %s2419_s30, 4  ;;  %s1678_s7 = int_to_ptr.vmem [resolvable:$true] %s1677_s7 }
 0x366   :  { %s2377_s8 = scalar_lea.vmem %s1678_s7, 384  ;;  %p2382_p3 = scmp.lt.s32.totalorder %s1678_s7, %s1678_s7 }
 0x367   :  { %p2378_p2 = scmp.ne.s32.totalorder %s1678_s7, %s2377_s8  ;;  %p2383_p4 = scmp.lt.s32.totalorder %s2377_s8, %s2377_s8 }
 0x369   :  { %p2384_p5 = por %p2383_p4, %p2382_p3 }
 0x36b   :  { %p2385_p6 = pnand %p2384_p5, %p2378_p2 }
 0x36e   :  { %v2256_v62 = vpop.eup %2255 }
 0x36f   :  { %v1666_v63 = vmul.f32 %v2256_v62, %v2254_v61 }
 0x371   :  { %1670 = vst [vmem:[#allocation12 + $0x10] sm:$0xff] %v1666_v63 }
 0x372   :  { %2388 = shalt.err (!%p2385_p6)
}
 0x373   :  { %1683 = dma.vmem_to_hbm [thread:$0]  %s1678_s7, 384, %s2513_s5, [#allocation5], %s2408_s24, %s2408_s24, %s2409_s25  }
 0x374   :  { %2403 = dma.done.wait [#allocation5], 384  }
 0x375   :  { %2404 = vsyncadd [#allocation5], 4294966912 }
 0x376   :  { %2405 = dma.done.wait [#allocation14], 384  }
 0x377   :  { %2406 = vsyncadd [#allocation14], 4294966912 }
 0x378   :  { %1702 = vsyncpa [#allocation4], 1 }
 0x379   :  { %1703 = vsyncpa [#allocation7], 1 }
 0x37a   :  { %1704 = vsyncpa [#allocation10], 1 }
 0x37b   :  { %1705 = vsyncpa [#allocation5], 1 }
 0x37c   :  { %1706 = vsyncpa [#allocation14], 1 }

</bundles_post_ra>
